<compile_context>
chip_gen: v6e
topology: v6e:2x2x1
jax: 0.10.0
libtpu: 0.0.40
codegen_flags: <defaults>
</compile_context>

<pallas_src>
from functools import partial

import jax
import jax.numpy as jnp
from jax.experimental import pallas as pl
from jax.experimental.pallas import tpu as pltpu

INPUT_SIZE = 1
HIDDEN_SIZE = 512
OUTPUT_SIZE = 1


def _mlp_kernel(x_ref, w1_ref, b1_ref, w2_ref, b2_ref, o_ref):
    """One batch tile: x_ref is (1, TB) lane-dense, weights are (H, 1) columns."""
    x = x_ref[...]                                   # (1, TB)  batch on lanes
    w1 = w1_ref[...]                                 # (H, 1)
    b1 = b1_ref[...]                                 # (H, 1)
    w2 = w2_ref[...]                                 # (H, 1)

    # fc1 + ReLU: K=1 contraction -> pure VPU broadcast multiply-add (no MXU).
    h = jnp.maximum(w1 * x + b1, 0.0)                # (H, TB)

    # fc2: N=1 output -> VPU multiply + cross-sublane (XLU) reduce (no MXU).
    y = jnp.sum(h * w2, axis=0, keepdims=True)       # (1, TB)

    # Scalar bias from SMEM (avoids a lane-padded VMEM tile for one float).
    o_ref[...] = (y + b2_ref[0, 0]).astype(o_ref.dtype)


@partial(jax.jit, static_argnames=("tb",))
def feedforward_nn(x, w1, b1, w2, b2, *, tb=512):
    """Forward pass matching PyTorch FeedForwardNN.

    x : (B, 1) float32
    w1: (HIDDEN, 1)   = fc1.weight      b1: (HIDDEN,) = fc1.bias
    w2: (1, HIDDEN)   = fc2.weight      b2: (1,)      = fc2.bias
    returns (B, 1) float32
    """
    B = x.shape[0]
    H = HIDDEN_SIZE

    # Batch tile: multiple of 128 lanes, clamped to the padded batch so small
    # batches don't waste VPU work on padding lanes.
    tb = max(128, (tb // 128) * 128)
    tb = min(tb, 128 * pl.cdiv(B, 128))

    # Lane-dense batch layout, padded to a multiple of the batch tile.
    n_blocks = pl.cdiv(B, tb)
    b_pad = n_blocks * tb
    x_lane = jnp.pad(x[:, 0], (0, b_pad - B)).reshape(1, b_pad)

    # Kernel-side parameter layout: hidden along sublanes (column vectors).
    w1_col = w1.reshape(H, 1)
    b1_col = b1.reshape(H, 1)
    w2_col = w2.reshape(H, 1)
    b2_s = b2.reshape(1, 1)

    # VMEM budget: dominant live temporaries are a couple of (H, tb) f32
    # intermediates plus double-buffered (1, tb) I/O tiles — well under the
    # scoped default for tb <= 2048, but give the compiler headroom anyway.
    vmem_bytes = min(
        128 * 1024 * 1024,
        8 * H * tb * 4 + 1024 * 1024,
    )

    y_lane = pl.pallas_call(
        _mlp_kernel,
        out_shape=jax.ShapeDtypeStruct((1, b_pad), jnp.float32),
        grid=(n_blocks,),
        in_specs=[
            pl.BlockSpec((1, tb), lambda i: (0, i)),            # x tile (streams)
            pl.BlockSpec((H, 1), lambda i: (0, 0)),             # w1 (resident)
            pl.BlockSpec((H, 1), lambda i: (0, 0)),             # b1 (resident)
            pl.BlockSpec((H, 1), lambda i: (0, 0)),             # w2 (resident)
            pl.BlockSpec(memory_space=pltpu.MemorySpace.SMEM),  # b2 scalar
        ],
        out_specs=pl.BlockSpec((1, tb), lambda i: (0, i)),
        compiler_params=pltpu.CompilerParams(
            # Batch tiles are independent -> megacore-shardable on v7x.
            dimension_semantics=("parallel",),
            vmem_limit_bytes=vmem_bytes,
        ),
    )(x_lane, w1_col, b1_col, w2_col, b2_s)

    return y_lane[0, :B].reshape(B, OUTPUT_SIZE)


def init_params(key):
    """PyTorch-layout params with nn.Linear's default uniform init."""
    k1, k2, k3, k4 = jax.random.split(key, 4)
    bound1 = 1.0 / (INPUT_SIZE ** 0.5)
    w1 = jax.random.uniform(k1, (HIDDEN_SIZE, INPUT_SIZE), jnp.float32, -bound1, bound1)
    b1 = jax.random.uniform(k2, (HIDDEN_SIZE,), jnp.float32, -bound1, bound1)
    bound2 = 1.0 / (HIDDEN_SIZE ** 0.5)
    w2 = jax.random.uniform(k3, (OUTPUT_SIZE, HIDDEN_SIZE), jnp.float32, -bound2, bound2)
    b2 = jax.random.uniform(k4, (OUTPUT_SIZE,), jnp.float32, -bound2, bound2)
    return w1, b1, w2, b2


if __name__ == "__main__":
    key = jax.random.PRNGKey(0)
    kx, kp = jax.random.split(key)

    B = 8  # small demo batch
    x = jax.random.normal(kx, (B, INPUT_SIZE), dtype=jnp.float32)
    w1, b1, w2, b2 = init_params(kp)

    out = feedforward_nn(x, w1, b1, w2, b2)
    jax.block_until_ready(out)

    # Pure-JAX reference (identical math to PyTorch fc1 -> ReLU -> fc2).
    ref = jnp.maximum(x @ w1.T + b1[None, :], 0.0) @ w2.T + b2[None, :]
    assert out.shape == (B, OUTPUT_SIZE)
    assert jnp.allclose(out, ref, atol=1e-4, rtol=1e-4)

    print("KERNEL_OK")
</pallas_src>

<mosaic_0001>
module attributes {stable_mosaic.version = 11 : i64} {
  func.func @_mlp_kernel(%arg0: i32, %arg1: memref<1x128xf32, #tpu.memory_space<vmem>>, %arg2: memref<512x1xf32, #tpu.memory_space<vmem>>, %arg3: memref<512x1xf32, #tpu.memory_space<vmem>>, %arg4: memref<512x1xf32, #tpu.memory_space<vmem>>, %arg5: memref<1x1xf32, #tpu.memory_space<smem>>, %arg6: memref<1x128xf32, #tpu.memory_space<vmem>>) attributes {dimension_semantics = [#tpu.dimension_semantics<parallel>], iteration_bounds = array<i64: 1>, scalar_prefetch = 0 : i64, scratch_operands = 0 : i64, tpu.core_type = #tpu.core_type<tc>, window_params = [{transform_indices = @transform_0, window_bounds = array<i64: 1, 128>}, {pipeline_mode = #tpu.pipeline_mode<synchronous>, transform_indices = @transform_1, window_bounds = array<i64: 512, 1>}, {pipeline_mode = #tpu.pipeline_mode<synchronous>, transform_indices = @transform_2, window_bounds = array<i64: 512, 1>}, {pipeline_mode = #tpu.pipeline_mode<synchronous>, transform_indices = @transform_3, window_bounds = array<i64: 512, 1>}, {transform_indices = @transform_4, window_bounds = array<i64: 1, 1>}, {transform_indices = @transform_5, window_bounds = array<i64: 1, 128>}]} {
    %c0 = arith.constant 0 : index
    %c0_0 = arith.constant 0 : index
    %0 = vector.load %arg1[%c0, %c0_0] : memref<1x128xf32, #tpu.memory_space<vmem>>, vector<1x128xf32>
    %c0_1 = arith.constant 0 : index
    %c0_2 = arith.constant 0 : index
    %1 = vector.load %arg2[%c0_1, %c0_2] : memref<512x1xf32, #tpu.memory_space<vmem>>, vector<512x1xf32>
    %c0_3 = arith.constant 0 : index
    %c0_4 = arith.constant 0 : index
    %2 = vector.load %arg3[%c0_3, %c0_4] : memref<512x1xf32, #tpu.memory_space<vmem>>, vector<512x1xf32>
    %c0_5 = arith.constant 0 : index
    %c0_6 = arith.constant 0 : index
    %3 = vector.load %arg4[%c0_5, %c0_6] : memref<512x1xf32, #tpu.memory_space<vmem>>, vector<512x1xf32>
    %4 = vector.broadcast %1 : vector<512x1xf32> to vector<512x128xf32>
    %5 = vector.broadcast %0 : vector<1x128xf32> to vector<512x128xf32>
    %6 = arith.mulf %4, %5 : vector<512x128xf32>
    %7 = vector.broadcast %2 : vector<512x1xf32> to vector<512x128xf32>
    %8 = arith.addf %6, %7 : vector<512x128xf32>
    %cst = arith.constant 0.000000e+00 : f32
    %9 = vector.broadcast %cst : f32 to vector<512x128xf32>
    %10 = arith.maximumf %8, %9 : vector<512x128xf32>
    %11 = vector.broadcast %3 : vector<512x1xf32> to vector<512x128xf32>
    %12 = arith.mulf %10, %11 : vector<512x128xf32>
    %cst_7 = arith.constant dense<0.000000e+00> : vector<128xf32>
    %13 = vector.multi_reduction <add>, %12, %cst_7 [0] : vector<512x128xf32> to vector<128xf32>
    %14 = vector.shape_cast %13 : vector<128xf32> to vector<1x128xf32>
    %c0_8 = arith.constant 0 : index
    %c0_9 = arith.constant 0 : index
    %15 = memref.load %arg5[%c0_8, %c0_9] : memref<1x1xf32, #tpu.memory_space<smem>>
    %16 = vector.broadcast %15 : f32 to vector<1x128xf32>
    %17 = arith.addf %14, %16 : vector<1x128xf32>
    %c0_10 = arith.constant 0 : index
    %c0_11 = arith.constant 0 : index
    %18 = vector.load %arg6[%c0_10, %c0_11] : memref<1x128xf32, #tpu.memory_space<vmem>>, vector<1x128xf32>
    tpu.vector_store %arg6[%c0_10, %c0_11], %17 {strides = array<i32>} : memref<1x128xf32, #tpu.memory_space<vmem>>, vector<1x128xf32>,
    return
  }
  func.func @transform_0(%arg0: i32) -> (i32, i32) {
    %c0_i32 = arith.constant 0 : i32
    %c0_i32_0 = arith.constant 0 : i32
    return %c0_i32, %arg0 : i32, i32
  }
  func.func @transform_1(%arg0: i32) -> (i32, i32) {
    %c0_i32 = arith.constant 0 : i32
    %c0_i32_0 = arith.constant 0 : i32
    %c0_i32_1 = arith.constant 0 : i32
    return %c0_i32, %c0_i32_0 : i32, i32
  }
  func.func @transform_2(%arg0: i32) -> (i32, i32) {
    %c0_i32 = arith.constant 0 : i32
    %c0_i32_0 = arith.constant 0 : i32
    %c0_i32_1 = arith.constant 0 : i32
    return %c0_i32, %c0_i32_0 : i32, i32
  }
  func.func @transform_3(%arg0: i32) -> (i32, i32) {
    %c0_i32 = arith.constant 0 : i32
    %c0_i32_0 = arith.constant 0 : i32
    %c0_i32_1 = arith.constant 0 : i32
    return %c0_i32, %c0_i32_0 : i32, i32
  }
  func.func @transform_4(%arg0: i32) -> (i32, i32) {
    %c0_i32 = arith.constant 0 : i32
    %c0_i32_0 = arith.constant 0 : i32
    %c0_i32_1 = arith.constant 0 : i32
    return %c0_i32, %c0_i32_0 : i32, i32
  }
  func.func @transform_5(%arg0: i32) -> (i32, i32) {
    %c0_i32 = arith.constant 0 : i32
    %c0_i32_0 = arith.constant 0 : i32
    return %c0_i32, %arg0 : i32, i32
  }
}

</mosaic_0001>

<bundles_post_ra>
// kernel: feedforward_nn.1
= control target key start
LH: loop header
LB: loop body
LE: loop exit
PB: predicated region body
PF: predicated region fallthrough
CT: control target
= control target key end

     0   :  { %v1517_v0 = vmov 0   ;;  %s2583_s1 = inlined_call_operand.vmem [shape: f32[512,1], index: 1, kind: input, shape index: {}]   ;;  %s2584_s2 = inlined_call_operand.vmem [shape: f32[512,1], index: 2, kind: input, shape index: {}]   ;;  %s2585_s3 = inlined_call_operand.vmem [shape: f32[512,1], index: 3, kind: input, shape index: {}]   ;;  %s2586_s0 = inlined_call_operand.vmem [shape: f32[1,128], index: 0, kind: input, shape index: {}]   ;;  %s2587_s4 = inlined_call_operand.<no memory space> [shape: f32[1,1], index: 4, kind: input, shape index: {}]   ;;  %s2588_s5 = inlined_call_operand.vmem [shape: f32[1,128], index: 5, kind: output, shape index: {}]  }
   0x1   :  { %1516 = vset.pattern.permute.xlu1 %v1517_v0  ;;  %1515 = vset.pattern.permute.xlu0 %v1517_v0  ;;  %v24_v1 = vld [vmem:[%s2583_s1 + $0x10] sm:$0xff]  ;;  %v22_v2 = vld [vmem:[%s2583_s1] sm:$0xff]  ;;  %v25_v3 = vld [vmem:[%s2583_s1 + $0x18] sm:$0xff] }
   0x2   :  { %226 = vperm.xlu1 %1516, %v24_v1   ;;  %216 = vperm.xlu0 %1515, %v22_v2   ;;  %v23_v4 = vld [vmem:[%s2583_s1 + $0x8] sm:$0xff]  ;;  %v26_v6 = vld [vmem:[%s2583_s1 + $0x20] sm:$0xff]  ;;  %v29_v7 = vld [vmem:[%s2583_s1 + $0x38] sm:$0xff] }
   0x3   :  { %v27_v5 = vld [vmem:[%s2583_s1 + $0x28] sm:$0xff]  ;;  %v28_v8 = vld [vmem:[%s2583_s1 + $0x30] sm:$0xff]  ;;  %v30_v10 = vld [vmem:[%s2583_s1 + $0x40] sm:$0xff] }
   0x4   :  { %v31_v9 = vld [vmem:[%s2583_s1 + $0x48] sm:$0xff]  ;;  %v33_v11 = vld [vmem:[%s2583_s1 + $0x58] sm:$0xff]  ;;  %v32_v12 = vld [vmem:[%s2583_s1 + $0x50] sm:$0xff] }
   0x5   :  { %v35_v13 = vld [vmem:[%s2583_s1 + $0x68] sm:$0xff]  ;;  %v34_v14 = vld [vmem:[%s2583_s1 + $0x60] sm:$0xff]  ;;  %v37_v15 = vld [vmem:[%s2583_s1 + $0x78] sm:$0xff] }
   0x6   :  { %231 = vperm.xlu1 %1516, %v25_v3   ;;  %221 = vperm.xlu0 %1515, %v23_v4   ;;  %v36_v16 = vld [vmem:[%s2583_s1 + $0x70] sm:$0xff]  ;;  %v39_v17 = vld [vmem:[%s2583_s1 + $0x88] sm:$0xff]  ;;  %v38_v18 = vld [vmem:[%s2583_s1 + $0x80] sm:$0xff] }
   0x7   :  { %v41_v19 = vld [vmem:[%s2583_s1 + $0x98] sm:$0xff]  ;;  %v40_v20 = vld [vmem:[%s2583_s1 + $0x90] sm:$0xff]  ;;  %v43_v21 = vld [vmem:[%s2583_s1 + $0xa8] sm:$0xff] }
   0x8   :  { %v42_v22 = vld [vmem:[%s2583_s1 + $0xa0] sm:$0xff]  ;;  %v45_v23 = vld [vmem:[%s2583_s1 + $0xb8] sm:$0xff]  ;;  %v44_v24 = vld [vmem:[%s2583_s1 + $0xb0] sm:$0xff] }
   0x9   :  { %v47_v25 = vld [vmem:[%s2583_s1 + $0xc8] sm:$0xff]  ;;  %v46_v26 = vld [vmem:[%s2583_s1 + $0xc0] sm:$0xff]  ;;  %v49_v27 = vld [vmem:[%s2583_s1 + $0xd8] sm:$0xff] }
   0xa   :  { %241 = vperm.xlu1 %1516, %v27_v5   ;;  %236 = vperm.xlu0 %1515, %v26_v6   ;;  %v48_v28 = vld [vmem:[%s2583_s1 + $0xd0] sm:$0xff]  ;;  %v51_v29 = vld [vmem:[%s2583_s1 + $0xe8] sm:$0xff]  ;;  %v50_v30 = vld [vmem:[%s2583_s1 + $0xe0] sm:$0xff] }
   0xb   :  { %v53_v31 = vld [vmem:[%s2583_s1 + $0xf8] sm:$0xff]  ;;  %v52_v32 = vld [vmem:[%s2583_s1 + $0xf0] sm:$0xff]  ;;  %v55_v33 = vld [vmem:[%s2583_s1 + $0x108] sm:$0xff] }
   0xc   :  { %v54_v34 = vld [vmem:[%s2583_s1 + $0x100] sm:$0xff]  ;;  %v57_v35 = vld [vmem:[%s2583_s1 + $0x118] sm:$0xff]  ;;  %v56_v36 = vld [vmem:[%s2583_s1 + $0x110] sm:$0xff] }
   0xd   :  { %v59_v37 = vld [vmem:[%s2583_s1 + $0x128] sm:$0xff]  ;;  %v58_v38 = vld [vmem:[%s2583_s1 + $0x120] sm:$0xff]  ;;  %v61_v39 = vld [vmem:[%s2583_s1 + $0x138] sm:$0xff] }
   0xe   :  { %251 = vperm.xlu1 %1516, %v29_v7   ;;  %246 = vperm.xlu0 %1515, %v28_v8   ;;  %v60_v40 = vld [vmem:[%s2583_s1 + $0x130] sm:$0xff]  ;;  %v63_v41 = vld [vmem:[%s2583_s1 + $0x148] sm:$0xff]  ;;  %v62_v42 = vld [vmem:[%s2583_s1 + $0x140] sm:$0xff] }
   0xf   :  { %v65_v43 = vld [vmem:[%s2583_s1 + $0x158] sm:$0xff]  ;;  %v64_v44 = vld [vmem:[%s2583_s1 + $0x150] sm:$0xff]  ;;  %v67_v45 = vld [vmem:[%s2583_s1 + $0x168] sm:$0xff] }
  0x10   :  { %v66_v46 = vld [vmem:[%s2583_s1 + $0x160] sm:$0xff]  ;;  %v69_v47 = vld [vmem:[%s2583_s1 + $0x178] sm:$0xff]  ;;  %v68_v48 = vld [vmem:[%s2583_s1 + $0x170] sm:$0xff] }
  0x11   :  { %v71_v49 = vld [vmem:[%s2583_s1 + $0x188] sm:$0xff]  ;;  %v70_v50 = vld [vmem:[%s2583_s1 + $0x180] sm:$0xff]  ;;  %v73_v51 = vld [vmem:[%s2583_s1 + $0x198] sm:$0xff] }
  0x12   :  { %261 = vperm.xlu1 %1516, %v31_v9   ;;  %256 = vperm.xlu0 %1515, %v30_v10   ;;  %v72_v52 = vld [vmem:[%s2583_s1 + $0x190] sm:$0xff]  ;;  %v75_v53 = vld [vmem:[%s2583_s1 + $0x1a8] sm:$0xff]  ;;  %v74_v54 = vld [vmem:[%s2583_s1 + $0x1a0] sm:$0xff] }
  0x13   :  { %v77_v55 = vld [vmem:[%s2583_s1 + $0x1b8] sm:$0xff]  ;;  %v76_v56 = vld [vmem:[%s2583_s1 + $0x1b0] sm:$0xff]  ;;  %v79_v57 = vld [vmem:[%s2583_s1 + $0x1c8] sm:$0xff] }
  0x14   :  { %v78_v58 = vld [vmem:[%s2583_s1 + $0x1c0] sm:$0xff]  ;;  %v81_v59 = vld [vmem:[%s2583_s1 + $0x1d8] sm:$0xff]  ;;  %v80_v60 = vld [vmem:[%s2583_s1 + $0x1d0] sm:$0xff] }
  0x15   :  { %v83_v61 = vld [vmem:[%s2583_s1 + $0x1e8] sm:$0xff]  ;;  %v82_v62 = vld [vmem:[%s2583_s1 + $0x1e0] sm:$0xff]  ;;  %v85_v63 = vld [vmem:[%s2583_s1 + $0x1f8] sm:$0xff] }
  0x16   :  { %271 = vperm.xlu1 %1516, %v33_v11   ;;  %266 = vperm.xlu0 %1515, %v32_v12   ;;  %v84_v0 = vld [vmem:[%s2583_s1 + $0x1f0] sm:$0xff]  ;;  %v87_v3 = vld [vmem:[%s2584_s2 + $0x8] sm:$0xff]  ;;  %v86_v4 = vld [vmem:[%s2584_s2] sm:$0xff] }
  0x17   :  { %v89_v7 = vld [vmem:[%s2584_s2 + $0x18] sm:$0xff]  ;;  %v88_v8 = vld [vmem:[%s2584_s2 + $0x10] sm:$0xff]  ;;  %v91_v11 = vld [vmem:[%s2584_s2 + $0x28] sm:$0xff] }
  0x18   :  { %v90_v12 = vld [vmem:[%s2584_s2 + $0x20] sm:$0xff] }
  0x1a   :  { %281 = vperm.xlu1 %1516, %v35_v13   ;;  %276 = vperm.xlu0 %1515, %v34_v14  }
  0x1e   :  { %291 = vperm.xlu1 %1516, %v37_v15   ;;  %286 = vperm.xlu0 %1515, %v36_v16   ;;  %v93_v15 = vld [vmem:[%s2584_s2 + $0x38] sm:$0xff]  ;;  %v92_v16 = vld [vmem:[%s2584_s2 + $0x30] sm:$0xff] }
  0x22   :  { %301 = vperm.xlu1 %1516, %v39_v17   ;;  %296 = vperm.xlu0 %1515, %v38_v18  }
  0x26   :  { %311 = vperm.xlu1 %1516, %v41_v19   ;;  %306 = vperm.xlu0 %1515, %v40_v20   ;;  %v95_v19 = vld [vmem:[%s2584_s2 + $0x48] sm:$0xff]  ;;  %v94_v20 = vld [vmem:[%s2584_s2 + $0x40] sm:$0xff] }
  0x2a   :  { %321 = vperm.xlu1 %1516, %v43_v21   ;;  %316 = vperm.xlu0 %1515, %v42_v22  }
  0x2e   :  { %331 = vperm.xlu1 %1516, %v45_v23   ;;  %326 = vperm.xlu0 %1515, %v44_v24   ;;  %v97_v23 = vld [vmem:[%s2584_s2 + $0x58] sm:$0xff]  ;;  %v96_v24 = vld [vmem:[%s2584_s2 + $0x50] sm:$0xff] }
  0x32   :  { %341 = vperm.xlu1 %1516, %v47_v25   ;;  %336 = vperm.xlu0 %1515, %v46_v26  }
  0x36   :  { %351 = vperm.xlu1 %1516, %v49_v27   ;;  %346 = vperm.xlu0 %1515, %v48_v28   ;;  %v99_v27 = vld [vmem:[%s2584_s2 + $0x68] sm:$0xff]  ;;  %v98_v28 = vld [vmem:[%s2584_s2 + $0x60] sm:$0xff] }
  0x3a   :  { %361 = vperm.xlu1 %1516, %v51_v29   ;;  %356 = vperm.xlu0 %1515, %v50_v30  }
  0x3e   :  { %371 = vperm.xlu1 %1516, %v53_v31   ;;  %366 = vperm.xlu0 %1515, %v52_v32   ;;  %v101_v31 = vld [vmem:[%s2584_s2 + $0x78] sm:$0xff]  ;;  %v100_v32 = vld [vmem:[%s2584_s2 + $0x70] sm:$0xff] }
  0x42   :  { %381 = vperm.xlu1 %1516, %v55_v33   ;;  %376 = vperm.xlu0 %1515, %v54_v34  }
  0x46   :  { %391 = vperm.xlu1 %1516, %v57_v35   ;;  %386 = vperm.xlu0 %1515, %v56_v36   ;;  %v103_v35 = vld [vmem:[%s2584_s2 + $0x88] sm:$0xff]  ;;  %v102_v36 = vld [vmem:[%s2584_s2 + $0x80] sm:$0xff] }
  0x4a   :  { %401 = vperm.xlu1 %1516, %v59_v37   ;;  %396 = vperm.xlu0 %1515, %v58_v38  }
  0x4e   :  { %411 = vperm.xlu1 %1516, %v61_v39   ;;  %406 = vperm.xlu0 %1515, %v60_v40   ;;  %v105_v39 = vld [vmem:[%s2584_s2 + $0x98] sm:$0xff]  ;;  %v104_v40 = vld [vmem:[%s2584_s2 + $0x90] sm:$0xff] }
  0x52   :  { %421 = vperm.xlu1 %1516, %v63_v41   ;;  %416 = vperm.xlu0 %1515, %v62_v42  }
  0x56   :  { %431 = vperm.xlu1 %1516, %v65_v43   ;;  %426 = vperm.xlu0 %1515, %v64_v44   ;;  %v107_v43 = vld [vmem:[%s2584_s2 + $0xa8] sm:$0xff]  ;;  %v106_v44 = vld [vmem:[%s2584_s2 + $0xa0] sm:$0xff] }
  0x5a   :  { %441 = vperm.xlu1 %1516, %v67_v45   ;;  %436 = vperm.xlu0 %1515, %v66_v46  }
  0x5e   :  { %451 = vperm.xlu1 %1516, %v69_v47   ;;  %446 = vperm.xlu0 %1515, %v68_v48   ;;  %v109_v47 = vld [vmem:[%s2584_s2 + $0xb8] sm:$0xff]  ;;  %v108_v48 = vld [vmem:[%s2584_s2 + $0xb0] sm:$0xff] }
  0x62   :  { %461 = vperm.xlu1 %1516, %v71_v49   ;;  %456 = vperm.xlu0 %1515, %v70_v50  }
  0x66   :  { %471 = vperm.xlu1 %1516, %v73_v51   ;;  %466 = vperm.xlu0 %1515, %v72_v52   ;;  %v111_v51 = vld [vmem:[%s2584_s2 + $0xc8] sm:$0xff]  ;;  %v110_v52 = vld [vmem:[%s2584_s2 + $0xc0] sm:$0xff] }
  0x6a   :  { %481 = vperm.xlu1 %1516, %v75_v53   ;;  %476 = vperm.xlu0 %1515, %v74_v54  }
  0x6e   :  { %491 = vperm.xlu1 %1516, %v77_v55   ;;  %486 = vperm.xlu0 %1515, %v76_v56   ;;  %v113_v55 = vld [vmem:[%s2584_s2 + $0xd8] sm:$0xff]  ;;  %v112_v56 = vld [vmem:[%s2584_s2 + $0xd0] sm:$0xff] }
  0x72   :  { %501 = vperm.xlu1 %1516, %v79_v57   ;;  %496 = vperm.xlu0 %1515, %v78_v58  }
  0x76   :  { %511 = vperm.xlu1 %1516, %v81_v59   ;;  %506 = vperm.xlu0 %1515, %v80_v60   ;;  %v115_v59 = vld [vmem:[%s2584_s2 + $0xe8] sm:$0xff]  ;;  %v114_v60 = vld [vmem:[%s2584_s2 + $0xe0] sm:$0xff] }
  0x7a   :  { %521 = vperm.xlu1 %1516, %v83_v61   ;;  %516 = vperm.xlu0 %1515, %v82_v62  }
  0x7d   :  { %v1740_v1 = vpop.permute.xlu1 %226  ;;  %v1742_v2 = vpop.permute.xlu0 %216 }
  0x7e   :  { %531 = vperm.xlu1 %1516, %v85_v63   ;;  %526 = vperm.xlu0 %1515, %v84_v0   ;;  %v117_v63 = vld [vmem:[%s2584_s2 + $0xf8] sm:$0xff]  ;;  %v116_v0 = vld [vmem:[%s2584_s2 + $0xf0] sm:$0xff] }
  0x81   :  { %v1750_v5 = vpop.permute.xlu1 %231  ;;  %v1752_v6 = vpop.permute.xlu0 %221 }
  0x82   :  { %611 = vperm.xlu1 %1516, %v87_v3   ;;  %606 = vperm.xlu0 %1515, %v86_v4  }
  0x85   :  { %v1760_v9 = vpop.permute.xlu1 %241  ;;  %v1762_v10 = vpop.permute.xlu0 %236 }
  0x86   :  { %621 = vperm.xlu1 %1516, %v89_v7   ;;  %616 = vperm.xlu0 %1515, %v88_v8   ;;  %v119_v7 = vld [vmem:[%s2584_s2 + $0x108] sm:$0xff]  ;;  %v118_v8 = vld [vmem:[%s2584_s2 + $0x100] sm:$0xff] }
  0x89   :  { %v1770_v13 = vpop.permute.xlu1 %251  ;;  %v1772_v14 = vpop.permute.xlu0 %246 }
  0x8a   :  { %631 = vperm.xlu1 %1516, %v91_v11   ;;  %626 = vperm.xlu0 %1515, %v90_v12  }
  0x8d   :  { %v1780_v17 = vpop.permute.xlu1 %261  ;;  %v1782_v18 = vpop.permute.xlu0 %256 }
  0x8e   :  { %641 = vperm.xlu1 %1516, %v93_v15   ;;  %636 = vperm.xlu0 %1515, %v92_v16   ;;  %v121_v15 = vld [vmem:[%s2584_s2 + $0x118] sm:$0xff]  ;;  %v120_v16 = vld [vmem:[%s2584_s2 + $0x110] sm:$0xff] }
  0x91   :  { %v1790_v21 = vpop.permute.xlu1 %271  ;;  %v1792_v22 = vpop.permute.xlu0 %266 }
  0x92   :  { %651 = vperm.xlu1 %1516, %v95_v19   ;;  %646 = vperm.xlu0 %1515, %v94_v20  }
  0x95   :  { %v1800_v25 = vpop.permute.xlu1 %281  ;;  %v1802_v26 = vpop.permute.xlu0 %276 }
  0x96   :  { %661 = vperm.xlu1 %1516, %v97_v23   ;;  %656 = vperm.xlu0 %1515, %v96_v24   ;;  %v123_v23 = vld [vmem:[%s2584_s2 + $0x128] sm:$0xff]  ;;  %v122_v24 = vld [vmem:[%s2584_s2 + $0x120] sm:$0xff] }
  0x99   :  { %v1810_v29 = vpop.permute.xlu1 %291  ;;  %v1812_v30 = vpop.permute.xlu0 %286 }
  0x9a   :  { %671 = vperm.xlu1 %1516, %v99_v27   ;;  %666 = vperm.xlu0 %1515, %v98_v28  }
  0x9d   :  { %v1820_v33 = vpop.permute.xlu1 %301  ;;  %v1822_v34 = vpop.permute.xlu0 %296 }
  0x9e   :  { %681 = vperm.xlu1 %1516, %v101_v31   ;;  %676 = vperm.xlu0 %1515, %v100_v32   ;;  %v125_v31 = vld [vmem:[%s2584_s2 + $0x138] sm:$0xff]  ;;  %v124_v32 = vld [vmem:[%s2584_s2 + $0x130] sm:$0xff] }
  0xa1   :  { %v1830_v37 = vpop.permute.xlu1 %311  ;;  %v1832_v38 = vpop.permute.xlu0 %306 }
  0xa2   :  { %691 = vperm.xlu1 %1516, %v103_v35   ;;  %686 = vperm.xlu0 %1515, %v102_v36  }
  0xa5   :  { %v1840_v41 = vpop.permute.xlu1 %321  ;;  %v1842_v42 = vpop.permute.xlu0 %316 }
  0xa6   :  { %701 = vperm.xlu1 %1516, %v105_v39   ;;  %696 = vperm.xlu0 %1515, %v104_v40   ;;  %v127_v39 = vld [vmem:[%s2584_s2 + $0x148] sm:$0xff]  ;;  %v126_v40 = vld [vmem:[%s2584_s2 + $0x140] sm:$0xff] }
  0xa9   :  { %v1850_v45 = vpop.permute.xlu1 %331  ;;  %v1852_v46 = vpop.permute.xlu0 %326 }
  0xaa   :  { %711 = vperm.xlu1 %1516, %v107_v43   ;;  %706 = vperm.xlu0 %1515, %v106_v44  }
  0xad   :  { %v1860_v49 = vpop.permute.xlu1 %341  ;;  %v1862_v50 = vpop.permute.xlu0 %336 }
  0xae   :  { %721 = vperm.xlu1 %1516, %v109_v47   ;;  %716 = vperm.xlu0 %1515, %v108_v48   ;;  %v129_v47 = vld [vmem:[%s2584_s2 + $0x158] sm:$0xff]  ;;  %v128_v48 = vld [vmem:[%s2584_s2 + $0x150] sm:$0xff] }
  0xb1   :  { %v1870_v53 = vpop.permute.xlu1 %351  ;;  %v1872_v54 = vpop.permute.xlu0 %346 }
  0xb2   :  { %2589 = vst [vmem:[#allocation3_spill] sm:$0xff] %v1870_v53  ;;  %2590 = vst [vmem:[#allocation4_spill] sm:$0xff] %v1872_v54  ;;  %731 = vperm.xlu1 %1516, %v111_v51   ;;  %726 = vperm.xlu0 %1515, %v110_v52  }
  0xb5   :  { %v1880_v57 = vpop.permute.xlu1 %361  ;;  %v1882_v58 = vpop.permute.xlu0 %356 }
  0xb6   :  { %2591 = vst [vmem:[#allocation5_spill] sm:$0xff] %v1880_v57  ;;  %2592 = vst [vmem:[#allocation6_spill] sm:$0xff] %v1882_v58  ;;  %741 = vperm.xlu1 %1516, %v113_v55   ;;  %736 = vperm.xlu0 %1515, %v112_v56   ;;  %v131_v55 = vld [vmem:[%s2584_s2 + $0x168] sm:$0xff]  ;;  %v130_v56 = vld [vmem:[%s2584_s2 + $0x160] sm:$0xff] }
  0xb7   :  { %v179_v57 = vld [vmem:[%s2585_s3 + $0xe8] sm:$0xff]  ;;  %v210_v58 = vld [vmem:[%s2585_s3 + $0x1e0] sm:$0xff] }
  0xb9   :  { %v1890_v61 = vpop.permute.xlu1 %371  ;;  %v1892_v62 = vpop.permute.xlu0 %366 }
  0xba   :  { %2593 = vst [vmem:[#allocation7_spill] sm:$0xff] %v1890_v61  ;;  %2594 = vst [vmem:[#allocation8_spill] sm:$0xff] %v1892_v62  ;;  %751 = vperm.xlu1 %1516, %v115_v59   ;;  %746 = vperm.xlu0 %1515, %v114_v60   ;;  %v177_v61 = vld [vmem:[%s2585_s3 + $0xd8] sm:$0xff] }
  0xbd   :  { %v1900_v3 = vpop.permute.xlu1 %381  ;;  %v1902_v4 = vpop.permute.xlu0 %376 }
  0xbe   :  { %2595 = vst [vmem:[#allocation9_spill] sm:$0xff] %v1900_v3  ;;  %2596 = vst [vmem:[#allocation10_spill] sm:$0xff] %v1902_v4  ;;  %761 = vperm.xlu1 %1516, %v117_v63   ;;  %756 = vperm.xlu0 %1515, %v116_v0   ;;  %v133_v63 = vld [vmem:[%s2584_s2 + $0x178] sm:$0xff]  ;;  %v132_v0 = vld [vmem:[%s2584_s2 + $0x170] sm:$0xff] }
  0xbf   :  { %v175_v3 = vld [vmem:[%s2585_s3 + $0xc8] sm:$0xff] }
  0xc1   :  { %v1910_v11 = vpop.permute.xlu1 %391  ;;  %v1912_v12 = vpop.permute.xlu0 %386 }
  0xc2   :  { %2597 = vst [vmem:[#allocation11_spill] sm:$0xff] %v1910_v11  ;;  %2598 = vst [vmem:[#allocation12_spill] sm:$0xff] %v1912_v12  ;;  %771 = vperm.xlu1 %1516, %v119_v7   ;;  %766 = vperm.xlu0 %1515, %v118_v8   ;;  %v173_v11 = vld [vmem:[%s2585_s3 + $0xb8] sm:$0xff] }
  0xc5   :  { %v1920_v19 = vpop.permute.xlu1 %401  ;;  %v1922_v20 = vpop.permute.xlu0 %396 }
  0xc6   :  { %2599 = vst [vmem:[#allocation13_spill] sm:$0xff] %v1920_v19  ;;  %2600 = vst [vmem:[#allocation14_spill] sm:$0xff] %v1922_v20  ;;  %781 = vperm.xlu1 %1516, %v121_v15   ;;  %776 = vperm.xlu0 %1515, %v120_v16   ;;  %v135_v15 = vld [vmem:[%s2584_s2 + $0x188] sm:$0xff]  ;;  %v134_v16 = vld [vmem:[%s2584_s2 + $0x180] sm:$0xff] }
  0xc7   :  { %v171_v19 = vld [vmem:[%s2585_s3 + $0xa8] sm:$0xff] }
  0xc9   :  { %v1930_v27 = vpop.permute.xlu1 %411  ;;  %v1932_v28 = vpop.permute.xlu0 %406 }
  0xca   :  { %2601 = vst [vmem:[#allocation15_spill] sm:$0xff] %v1930_v27  ;;  %2602 = vst [vmem:[#allocation16_spill] sm:$0xff] %v1932_v28  ;;  %791 = vperm.xlu1 %1516, %v123_v23   ;;  %786 = vperm.xlu0 %1515, %v122_v24   ;;  %v169_v27 = vld [vmem:[%s2585_s3 + $0x98] sm:$0xff] }
  0xcd   :  { %v1940_v35 = vpop.permute.xlu1 %421  ;;  %v1942_v36 = vpop.permute.xlu0 %416 }
  0xce   :  { %2603 = vst [vmem:[#allocation17_spill] sm:$0xff] %v1940_v35  ;;  %2604 = vst [vmem:[#allocation18_spill] sm:$0xff] %v1942_v36  ;;  %801 = vperm.xlu1 %1516, %v125_v31   ;;  %796 = vperm.xlu0 %1515, %v124_v32   ;;  %v137_v31 = vld [vmem:[%s2584_s2 + $0x198] sm:$0xff]  ;;  %v136_v32 = vld [vmem:[%s2584_s2 + $0x190] sm:$0xff] }
  0xcf   :  { %v167_v35 = vld [vmem:[%s2585_s3 + $0x88] sm:$0xff] }
  0xd1   :  { %v1950_v43 = vpop.permute.xlu1 %431  ;;  %v1952_v44 = vpop.permute.xlu0 %426 }
  0xd2   :  { %2605 = vst [vmem:[#allocation19_spill] sm:$0xff] %v1950_v43  ;;  %2606 = vst [vmem:[#allocation20_spill] sm:$0xff] %v1952_v44  ;;  %811 = vperm.xlu1 %1516, %v127_v39   ;;  %806 = vperm.xlu0 %1515, %v126_v40   ;;  %v165_v43 = vld [vmem:[%s2585_s3 + $0x78] sm:$0xff] }
  0xd5   :  { %v1960_v51 = vpop.permute.xlu1 %441  ;;  %v1962_v52 = vpop.permute.xlu0 %436 }
  0xd6   :  { %2607 = vst [vmem:[#allocation21_spill] sm:$0xff] %v1960_v51  ;;  %2608 = vst [vmem:[#allocation22_spill] sm:$0xff] %v1962_v52  ;;  %821 = vperm.xlu1 %1516, %v129_v47   ;;  %816 = vperm.xlu0 %1515, %v128_v48   ;;  %v139_v47 = vld [vmem:[%s2584_s2 + $0x1a8] sm:$0xff]  ;;  %v138_v48 = vld [vmem:[%s2584_s2 + $0x1a0] sm:$0xff] }
  0xd7   :  { %v163_v51 = vld [vmem:[%s2585_s3 + $0x68] sm:$0xff] }
  0xd9   :  { %v1970_v59 = vpop.permute.xlu1 %451  ;;  %v1972_v60 = vpop.permute.xlu0 %446 }
  0xda   :  { %2609 = vst [vmem:[#allocation23_spill] sm:$0xff] %v1970_v59  ;;  %2610 = vst [vmem:[#allocation24_spill] sm:$0xff] %v1972_v60  ;;  %831 = vperm.xlu1 %1516, %v131_v55   ;;  %826 = vperm.xlu0 %1515, %v130_v56   ;;  %v161_v59 = vld [vmem:[%s2585_s3 + $0x58] sm:$0xff] }
  0xdd   :  { %v1980_v7 = vpop.permute.xlu1 %461  ;;  %v1982_v8 = vpop.permute.xlu0 %456 }
  0xde   :  { %2611 = vst [vmem:[#allocation25_spill] sm:$0xff] %v1980_v7  ;;  %2612 = vst [vmem:[#allocation26_spill] sm:$0xff] %v1982_v8  ;;  %841 = vperm.xlu1 %1516, %v133_v63   ;;  %836 = vperm.xlu0 %1515, %v132_v0   ;;  %v141_v63 = vld [vmem:[%s2584_s2 + $0x1b8] sm:$0xff]  ;;  %v140_v0 = vld [vmem:[%s2584_s2 + $0x1b0] sm:$0xff] }
  0xdf   :  { %v159_v7 = vld [vmem:[%s2585_s3 + $0x48] sm:$0xff] }
  0xe1   :  { %v1990_v23 = vpop.permute.xlu1 %471  ;;  %v1992_v24 = vpop.permute.xlu0 %466 }
  0xe2   :  { %2613 = vst [vmem:[#allocation27_spill] sm:$0xff] %v1990_v23  ;;  %2614 = vst [vmem:[#allocation28_spill] sm:$0xff] %v1992_v24  ;;  %851 = vperm.xlu1 %1516, %v135_v15   ;;  %846 = vperm.xlu0 %1515, %v134_v16   ;;  %v157_v23 = vld [vmem:[%s2585_s3 + $0x38] sm:$0xff] }
  0xe5   :  { %v2000_v39 = vpop.permute.xlu1 %481  ;;  %v2002_v40 = vpop.permute.xlu0 %476 }
  0xe6   :  { %2615 = vst [vmem:[#allocation29_spill] sm:$0xff] %v2000_v39  ;;  %2616 = vst [vmem:[#allocation30_spill] sm:$0xff] %v2002_v40  ;;  %861 = vperm.xlu1 %1516, %v137_v31   ;;  %856 = vperm.xlu0 %1515, %v136_v32   ;;  %v143_v31 = vld [vmem:[%s2584_s2 + $0x1c8] sm:$0xff]  ;;  %v142_v32 = vld [vmem:[%s2584_s2 + $0x1c0] sm:$0xff] }
  0xe7   :  { %v155_v39 = vld [vmem:[%s2585_s3 + $0x28] sm:$0xff] }
  0xe9   :  { %v2010_v55 = vpop.permute.xlu1 %491  ;;  %v2012_v56 = vpop.permute.xlu0 %486 }
  0xea   :  { %2617 = vst [vmem:[#allocation31_spill] sm:$0xff] %v2010_v55  ;;  %2618 = vst [vmem:[#allocation32_spill] sm:$0xff] %v2012_v56  ;;  %871 = vperm.xlu1 %1516, %v139_v47   ;;  %866 = vperm.xlu0 %1515, %v138_v48   ;;  %v153_v55 = vld [vmem:[%s2585_s3 + $0x18] sm:$0xff] }
  0xed   :  { %v2020_v15 = vpop.permute.xlu1 %501  ;;  %v2022_v16 = vpop.permute.xlu0 %496 }
  0xee   :  { %2619 = vst [vmem:[#allocation33_spill] sm:$0xff] %v2020_v15  ;;  %2620 = vst [vmem:[#allocation34_spill] sm:$0xff] %v2022_v16  ;;  %881 = vperm.xlu1 %1516, %v141_v63   ;;  %876 = vperm.xlu0 %1515, %v140_v0   ;;  %v145_v15 = vld [vmem:[%s2584_s2 + $0x1d8] sm:$0xff]  ;;  %v144_v63 = vld [vmem:[%s2584_s2 + $0x1d0] sm:$0xff] }
  0xf1   :  { %v2030_v47 = vpop.permute.xlu1 %511  ;;  %v2032_v48 = vpop.permute.xlu0 %506 }
  0xf2   :  { %2621 = vst [vmem:[#allocation35_spill] sm:$0xff] %v2030_v47  ;;  %2622 = vst [vmem:[#allocation36_spill] sm:$0xff] %v2032_v48  ;;  %891 = vperm.xlu1 %1516, %v143_v31   ;;  %886 = vperm.xlu0 %1515, %v142_v32   ;;  %v147_v47 = vld [vmem:[%s2584_s2 + $0x1e8] sm:$0xff]  ;;  %v146_v31 = vld [vmem:[%s2584_s2 + $0x1e0] sm:$0xff] }
  0xf5   :  { %v2040_v0 = vpop.permute.xlu1 %521  ;;  %v2042_v16 = vpop.permute.xlu0 %516 }
  0xf6   :  { %2623 = vst [vmem:[#allocation37_spill] sm:$0xff] %v2040_v0  ;;  %2624 = vst [vmem:[#allocation38_spill] sm:$0xff] %v2042_v16  ;;  %901 = vperm.xlu1 %1516, %v145_v15   ;;  %896 = vperm.xlu0 %1515, %v144_v63   ;;  %v149_v0 = vld [vmem:[%s2584_s2 + $0x1f8] sm:$0xff]  ;;  %v148_v15 = vld [vmem:[%s2584_s2 + $0x1f0] sm:$0xff] }
  0xf9   :  { %v2050_v32 = vpop.permute.xlu1 %531  ;;  %v2052_v48 = vpop.permute.xlu0 %526 }
  0xfa   :  { %2625 = vst [vmem:[#allocation39_spill] sm:$0xff] %v2050_v32  ;;  %2626 = vst [vmem:[#allocation40_spill] sm:$0xff] %v2052_v48  ;;  %911 = vperm.xlu1 %1516, %v147_v47   ;;  %906 = vperm.xlu0 %1515, %v146_v31   ;;  %v151_v32 = vld [vmem:[%s2585_s3 + $0x8] sm:$0xff]  ;;  %v150_v47 = vld [vmem:[%s2585_s3] sm:$0xff] }
  0xfd   :  { %v2060_v63 = vpop.permute.xlu1 %611  ;;  %v2062_v16 = vpop.permute.xlu0 %606 }
  0xfe   :  { %921 = vperm.xlu1 %1516, %v149_v0   ;;  %916 = vperm.xlu0 %1515, %v148_v15   ;;  %v152_v0 = vld [vmem:[%s2585_s3 + $0x10] sm:$0xff] }
 0x101   :  { %v2070_v31 = vpop.permute.xlu1 %621  ;;  %v2072_v48 = vpop.permute.xlu0 %616 }
 0x102   :  { %1059 = vperm.xlu1 %1516, %v151_v32   ;;  %1054 = vperm.xlu0 %1515, %v150_v47   ;;  %v154_v32 = vld [vmem:[%s2585_s3 + $0x20] sm:$0xff] }
 0x105   :  { %v2080_v15 = vpop.permute.xlu1 %631  ;;  %v2082_v56 = vpop.permute.xlu0 %626 }
 0x106   :  { %1069 = vperm.xlu1 %1516, %v153_v55   ;;  %1064 = vperm.xlu0 %1515, %v152_v0   ;;  %v156_v55 = vld [vmem:[%s2585_s3 + $0x30] sm:$0xff] }
 0x109   :  { %v2090_v47 = vpop.permute.xlu1 %641  ;;  %v2092_v40 = vpop.permute.xlu0 %636 }
 0x10a   :  { %1079 = vperm.xlu1 %1516, %v155_v39   ;;  %1074 = vperm.xlu0 %1515, %v154_v32   ;;  %v158_v39 = vld [vmem:[%s2585_s3 + $0x40] sm:$0xff] }
 0x10d   :  { %v2100_v0 = vpop.permute.xlu1 %651  ;;  %v2102_v24 = vpop.permute.xlu0 %646 }
 0x10e   :  { %1089 = vperm.xlu1 %1516, %v157_v23   ;;  %1084 = vperm.xlu0 %1515, %v156_v55   ;;  %v160_v23 = vld [vmem:[%s2585_s3 + $0x50] sm:$0xff] }
 0x111   :  { %v2110_v32 = vpop.permute.xlu1 %661  ;;  %v2112_v8 = vpop.permute.xlu0 %656 }
 0x112   :  { %1099 = vperm.xlu1 %1516, %v159_v7   ;;  %1094 = vperm.xlu0 %1515, %v158_v39   ;;  %v162_v7 = vld [vmem:[%s2585_s3 + $0x60] sm:$0xff] }
 0x115   :  { %v2120_v55 = vpop.permute.xlu1 %671  ;;  %v2122_v60 = vpop.permute.xlu0 %666 }
 0x116   :  { %1109 = vperm.xlu1 %1516, %v161_v59   ;;  %1104 = vperm.xlu0 %1515, %v160_v23   ;;  %v164_v59 = vld [vmem:[%s2585_s3 + $0x70] sm:$0xff] }
 0x119   :  { %v2130_v39 = vpop.permute.xlu1 %681  ;;  %v2132_v52 = vpop.permute.xlu0 %676 }
 0x11a   :  { %1119 = vperm.xlu1 %1516, %v163_v51   ;;  %1114 = vperm.xlu0 %1515, %v162_v7   ;;  %v166_v51 = vld [vmem:[%s2585_s3 + $0x80] sm:$0xff] }
 0x11d   :  { %v2140_v23 = vpop.permute.xlu1 %691  ;;  %v2142_v44 = vpop.permute.xlu0 %686 }
 0x11e   :  { %1129 = vperm.xlu1 %1516, %v165_v43   ;;  %1124 = vperm.xlu0 %1515, %v164_v59   ;;  %v168_v43 = vld [vmem:[%s2585_s3 + $0x90] sm:$0xff] }
 0x121   :  { %v2150_v7 = vpop.permute.xlu1 %701  ;;  %v2152_v36 = vpop.permute.xlu0 %696 }
 0x122   :  { %1139 = vperm.xlu1 %1516, %v167_v35   ;;  %1134 = vperm.xlu0 %1515, %v166_v51   ;;  %v170_v35 = vld [vmem:[%s2585_s3 + $0xa0] sm:$0xff] }
 0x125   :  { %v2160_v59 = vpop.permute.xlu1 %711  ;;  %v2162_v28 = vpop.permute.xlu0 %706 }
 0x126   :  { %1149 = vperm.xlu1 %1516, %v169_v27   ;;  %1144 = vperm.xlu0 %1515, %v168_v43   ;;  %v172_v27 = vld [vmem:[%s2585_s3 + $0xb0] sm:$0xff] }
 0x129   :  { %v2170_v51 = vpop.permute.xlu1 %721  ;;  %v2172_v20 = vpop.permute.xlu0 %716 }
 0x12a   :  { %1159 = vperm.xlu1 %1516, %v171_v19   ;;  %1154 = vperm.xlu0 %1515, %v170_v35   ;;  %v174_v19 = vld [vmem:[%s2585_s3 + $0xc0] sm:$0xff] }
 0x12d   :  { %v2180_v43 = vpop.permute.xlu1 %731  ;;  %v2182_v12 = vpop.permute.xlu0 %726 }
 0x12e   :  { %2627 = vst [vmem:[#allocation41_spill] sm:$0xff] %v2180_v43  ;;  %2628 = vst [vmem:[#allocation42_spill] sm:$0xff] %v2182_v12  ;;  %1169 = vperm.xlu1 %1516, %v173_v11   ;;  %1164 = vperm.xlu0 %1515, %v172_v27   ;;  %v176_v11 = vld [vmem:[%s2585_s3 + $0xd0] sm:$0xff] }
 0x131   :  { %v2190_v35 = vpop.permute.xlu1 %741  ;;  %v2192_v4 = vpop.permute.xlu0 %736 }
 0x132   :  { %2629 = vst [vmem:[#allocation43_spill] sm:$0xff] %v2190_v35  ;;  %2630 = vst [vmem:[#allocation44_spill] sm:$0xff] %v2192_v4  ;;  %1179 = vperm.xlu1 %1516, %v175_v3   ;;  %1174 = vperm.xlu0 %1515, %v174_v19   ;;  %v178_v3 = vld [vmem:[%s2585_s3 + $0xe0] sm:$0xff] }
 0x135   :  { %v2200_v27 = vpop.permute.xlu1 %751  ;;  %v2202_v62 = vpop.permute.xlu0 %746 }
 0x136   :  { %2631 = vst [vmem:[#allocation45_spill] sm:$0xff] %v2200_v27  ;;  %2632 = vst [vmem:[#allocation46_spill] sm:$0xff] %v2202_v62  ;;  %1189 = vperm.xlu1 %1516, %v177_v61   ;;  %1184 = vperm.xlu0 %1515, %v176_v11   ;;  %v181_v27 = vld [vmem:[%s2585_s3 + $0xf8] sm:$0xff]  ;;  %v180_v61 = vld [vmem:[%s2585_s3 + $0xf0] sm:$0xff] }
 0x139   :  { %v2210_v19 = vpop.permute.xlu1 %761  ;;  %v2212_v35 = vpop.permute.xlu0 %756 }
 0x13a   :  { %2633 = vst [vmem:[#allocation47_spill] sm:$0xff] %v2210_v19  ;;  %2634 = vst [vmem:[#allocation48_spill] sm:$0xff] %v2212_v35  ;;  %1199 = vperm.xlu1 %1516, %v179_v57   ;;  %1194 = vperm.xlu0 %1515, %v178_v3   ;;  %v183_v19 = vld [vmem:[%s2585_s3 + $0x108] sm:$0xff]  ;;  %v182_v57 = vld [vmem:[%s2585_s3 + $0x100] sm:$0xff] }
 0x13d   :  { %v2220_v11 = vpop.permute.xlu1 %771  ;;  %v2222_v62 = vpop.permute.xlu0 %766 }
 0x13e   :  { %2635 = vst [vmem:[#allocation49_spill] sm:$0xff] %v2220_v11  ;;  %2636 = vst [vmem:[#allocation50_spill] sm:$0xff] %v2222_v62  ;;  %1209 = vperm.xlu1 %1516, %v181_v27   ;;  %1204 = vperm.xlu0 %1515, %v180_v61   ;;  %v185_v11 = vld [vmem:[%s2585_s3 + $0x118] sm:$0xff]  ;;  %v184_v27 = vld [vmem:[%s2585_s3 + $0x110] sm:$0xff] }
 0x141   :  { %v2230_v3 = vpop.permute.xlu1 %781  ;;  %v2232_v35 = vpop.permute.xlu0 %776 }
 0x142   :  { %2637 = vst [vmem:[#allocation51_spill] sm:$0xff] %v2230_v3  ;;  %2638 = vst [vmem:[#allocation52_spill] sm:$0xff] %v2232_v35  ;;  %1219 = vperm.xlu1 %1516, %v183_v19   ;;  %1214 = vperm.xlu0 %1515, %v182_v57   ;;  %v187_v3 = vld [vmem:[%s2585_s3 + $0x128] sm:$0xff]  ;;  %v186_v19 = vld [vmem:[%s2585_s3 + $0x120] sm:$0xff] }
 0x145   :  { %v2240_v61 = vpop.permute.xlu1 %791  ;;  %v2242_v62 = vpop.permute.xlu0 %786 }
 0x146   :  { %2639 = vst [vmem:[#allocation53_spill] sm:$0xff] %v2240_v61  ;;  %2640 = vst [vmem:[#allocation54_spill] sm:$0xff] %v2242_v62  ;;  %1229 = vperm.xlu1 %1516, %v185_v11   ;;  %1224 = vperm.xlu0 %1515, %v184_v27   ;;  %v189_v61 = vld [vmem:[%s2585_s3 + $0x138] sm:$0xff]  ;;  %v188_v11 = vld [vmem:[%s2585_s3 + $0x130] sm:$0xff] }
 0x149   :  { %v2250_v57 = vpop.permute.xlu1 %801  ;;  %v2252_v35 = vpop.permute.xlu0 %796 }
 0x14a   :  { %2641 = vst [vmem:[#allocation55_spill] sm:$0xff] %v2250_v57  ;;  %2642 = vst [vmem:[#allocation56_spill] sm:$0xff] %v2252_v35  ;;  %1239 = vperm.xlu1 %1516, %v187_v3   ;;  %1234 = vperm.xlu0 %1515, %v186_v19   ;;  %v191_v57 = vld [vmem:[%s2585_s3 + $0x148] sm:$0xff]  ;;  %v190_v3 = vld [vmem:[%s2585_s3 + $0x140] sm:$0xff] }
 0x14d   :  { %v2260_v27 = vpop.permute.xlu1 %811  ;;  %v2262_v62 = vpop.permute.xlu0 %806 }
 0x14e   :  { %2643 = vst [vmem:[#allocation57_spill] sm:$0xff] %v2260_v27  ;;  %2644 = vst [vmem:[#allocation58_spill] sm:$0xff] %v2262_v62  ;;  %1249 = vperm.xlu1 %1516, %v189_v61   ;;  %1244 = vperm.xlu0 %1515, %v188_v11   ;;  %v193_v27 = vld [vmem:[%s2585_s3 + $0x158] sm:$0xff]  ;;  %v192_v61 = vld [vmem:[%s2585_s3 + $0x150] sm:$0xff] }
 0x151   :  { %v2270_v19 = vpop.permute.xlu1 %821  ;;  %v2272_v35 = vpop.permute.xlu0 %816 }
 0x152   :  { %2645 = vst [vmem:[#allocation59_spill] sm:$0xff] %v2270_v19  ;;  %2646 = vst [vmem:[#allocation60_spill] sm:$0xff] %v2272_v35  ;;  %1259 = vperm.xlu1 %1516, %v191_v57   ;;  %1254 = vperm.xlu0 %1515, %v190_v3   ;;  %v195_v19 = vld [vmem:[%s2585_s3 + $0x168] sm:$0xff]  ;;  %v194_v57 = vld [vmem:[%s2585_s3 + $0x160] sm:$0xff] }
 0x155   :  { %v2280_v11 = vpop.permute.xlu1 %831  ;;  %v2282_v62 = vpop.permute.xlu0 %826 }
 0x156   :  { %2647 = vst [vmem:[#allocation61_spill] sm:$0xff] %v2280_v11  ;;  %2648 = vst [vmem:[#allocation62_spill] sm:$0xff] %v2282_v62  ;;  %1269 = vperm.xlu1 %1516, %v193_v27   ;;  %1264 = vperm.xlu0 %1515, %v192_v61   ;;  %v197_v11 = vld [vmem:[%s2585_s3 + $0x178] sm:$0xff]  ;;  %v196_v27 = vld [vmem:[%s2585_s3 + $0x170] sm:$0xff] }
 0x159   :  { %v2290_v3 = vpop.permute.xlu1 %841  ;;  %v2292_v35 = vpop.permute.xlu0 %836 }
 0x15a   :  { %2649 = vst [vmem:[#allocation63_spill] sm:$0xff] %v2290_v3  ;;  %2650 = vst [vmem:[#allocation64_spill] sm:$0xff] %v2292_v35  ;;  %1279 = vperm.xlu1 %1516, %v195_v19   ;;  %1274 = vperm.xlu0 %1515, %v194_v57   ;;  %v199_v3 = vld [vmem:[%s2585_s3 + $0x188] sm:$0xff]  ;;  %v198_v19 = vld [vmem:[%s2585_s3 + $0x180] sm:$0xff] }
 0x15d   :  { %v2300_v61 = vpop.permute.xlu1 %851  ;;  %v2302_v62 = vpop.permute.xlu0 %846 }
 0x15e   :  { %2651 = vst [vmem:[#allocation65_spill] sm:$0xff] %v2300_v61  ;;  %2652 = vst [vmem:[#allocation66_spill] sm:$0xff] %v2302_v62  ;;  %1289 = vperm.xlu1 %1516, %v197_v11   ;;  %1284 = vperm.xlu0 %1515, %v196_v27   ;;  %v201_v61 = vld [vmem:[%s2585_s3 + $0x198] sm:$0xff]  ;;  %v200_v11 = vld [vmem:[%s2585_s3 + $0x190] sm:$0xff] }
 0x161   :  { %v2310_v57 = vpop.permute.xlu1 %861  ;;  %v2312_v35 = vpop.permute.xlu0 %856 }
 0x162   :  { %2653 = vst [vmem:[#allocation67_spill] sm:$0xff] %v2310_v57  ;;  %2654 = vst [vmem:[#allocation68_spill] sm:$0xff] %v2312_v35  ;;  %1299 = vperm.xlu1 %1516, %v199_v3   ;;  %1294 = vperm.xlu0 %1515, %v198_v19   ;;  %v203_v57 = vld [vmem:[%s2585_s3 + $0x1a8] sm:$0xff]  ;;  %v202_v3 = vld [vmem:[%s2585_s3 + $0x1a0] sm:$0xff] }
 0x165   :  { %v2320_v27 = vpop.permute.xlu1 %871  ;;  %v2322_v62 = vpop.permute.xlu0 %866 }
 0x166   :  { %2655 = vst [vmem:[#allocation69_spill] sm:$0xff] %v2320_v27  ;;  %2656 = vst [vmem:[#allocation70_spill] sm:$0xff] %v2322_v62  ;;  %1309 = vperm.xlu1 %1516, %v201_v61   ;;  %1304 = vperm.xlu0 %1515, %v200_v11   ;;  %v205_v27 = vld [vmem:[%s2585_s3 + $0x1b8] sm:$0xff]  ;;  %v204_v61 = vld [vmem:[%s2585_s3 + $0x1b0] sm:$0xff] }
 0x169   :  { %v2330_v19 = vpop.permute.xlu1 %881  ;;  %v2332_v35 = vpop.permute.xlu0 %876 }
 0x16a   :  { %2657 = vst [vmem:[#allocation71_spill] sm:$0xff] %v2330_v19  ;;  %2658 = vst [vmem:[#allocation72_spill] sm:$0xff] %v2332_v35  ;;  %1319 = vperm.xlu1 %1516, %v203_v57   ;;  %1314 = vperm.xlu0 %1515, %v202_v3   ;;  %v207_v19 = vld [vmem:[%s2585_s3 + $0x1c8] sm:$0xff]  ;;  %v206_v57 = vld [vmem:[%s2585_s3 + $0x1c0] sm:$0xff] }
 0x16d   :  { %v2340_v11 = vpop.permute.xlu1 %891  ;;  %v2342_v62 = vpop.permute.xlu0 %886 }
 0x16e   :  { %2659 = vst [vmem:[#allocation73_spill] sm:$0xff] %v2340_v11  ;;  %2660 = vst [vmem:[#allocation74_spill] sm:$0xff] %v2342_v62  ;;  %1329 = vperm.xlu1 %1516, %v205_v27   ;;  %1324 = vperm.xlu0 %1515, %v204_v61   ;;  %v2357_v11 = vld [vmem:[%s2586_s0] ss:$0 sm:$0xff]  ;;  %v209_v27 = vld [vmem:[%s2585_s3 + $0x1d8] sm:$0xff] }
 0x16f   :  { %v208_v61 = vld [vmem:[%s2585_s3 + $0x1d0] sm:$0xff]  ;;  %v545_v43 = vmul.f32 %v2357_v11, %v1760_v9 }
 0x171   :  { %v2350_v3 = vpop.permute.xlu1 %901  ;;  %v2352_v35 = vpop.permute.xlu0 %896 }
 0x172   :  { %2661 = vst [vmem:[#allocation75_spill] sm:$0xff] %v2350_v3  ;;  %2662 = vst [vmem:[#allocation76_spill] sm:$0xff] %v2352_v35  ;;  %1339 = vperm.xlu1 %1516, %v207_v19   ;;  %1334 = vperm.xlu0 %1515, %v206_v57   ;;  %v540_v19 = vmul.f32 %v2357_v11, %v1742_v2  ;;  %v541_v57 = vmul.f32 %v2357_v11, %v1752_v6  ;;  %v211_v35 = vld [vmem:[%s2585_s3 + $0x1e8] sm:$0xff] }
 0x173   :  { %v542_v6 = vmul.f32 %v2357_v11, %v1740_v1  ;;  %v544_v1 = vmul.f32 %v2357_v11, %v1762_v10 }
 0x175   :  { %v2365_v62 = vpop.permute.xlu1 %911  ;;  %v2367_v3 = vpop.permute.xlu0 %906 }
 0x176   :  { %2663 = vst [vmem:[#allocation77_spill] sm:$0xff] %v2365_v62  ;;  %2664 = vst [vmem:[#allocation78_spill] sm:$0xff] %v2367_v3  ;;  %1349 = vperm.xlu1 %1516, %v209_v27   ;;  %1344 = vperm.xlu0 %1515, %v208_v61   ;;  %v925_v62 = vadd.f32 %v2060_v63, %v541_v57  ;;  %v924_v3 = vadd.f32 %v2062_v16, %v540_v19  ;;  %v213_v27 = vld [vmem:[%s2585_s3 + $0x1f8] sm:$0xff]  ;;  %v212_v61 = vld [vmem:[%s2585_s3 + $0x1f0] sm:$0xff] }
 0x177   :  { %v543_v16 = vmul.f32 %v2357_v11, %v1750_v5  ;;  %v926_v57 = vadd.f32 %v2072_v48, %v542_v6  ;;  %v928_v5 = vadd.f32 %v2082_v56, %v544_v1  ;;  %v929_v6 = vadd.f32 %v2080_v15, %v545_v43 }
 0x178   :  { %v989_v63 = vmax.f32 %v925_v62, 0.0  ;;  %v988_v19 = vmax.f32 %v924_v3, 0.0  ;;  %v546_v62 = vmul.f32 %v2357_v11, %v1772_v14  ;;  %v548_v56 = vmul.f32 %v2357_v11, %v1782_v18 }
 0x179   :  { %v2381_v4 = vpop.permute.xlu1 %921  ;;  %v2383_v2 = vpop.permute.xlu0 %916  ;;  %v990_v54 = vmax.f32 %v926_v57, 0.0  ;;  %v993_v57 = vmax.f32 %v929_v6, 0.0 }
 0x17a   :  { %2665 = vst [vmem:[#allocation79_spill] sm:$0xff] %v2381_v4  ;;  %2666 = vst [vmem:[#allocation80_spill] sm:$0xff] %v2383_v2  ;;  %1359 = vperm.xlu1 %1516, %v211_v35   ;;  %1354 = vperm.xlu0 %1515, %v210_v58   ;;  %v927_v4 = vadd.f32 %v2070_v31, %v543_v16  ;;  %v930_v16 = vadd.f32 %v2092_v40, %v546_v62 }
 0x17b   :  { %v551_v62 = vmul.f32 %v2357_v11, %v1790_v21 }
 0x17c   :  { %v991_v10 = vmax.f32 %v927_v4, 0.0 }
 0x17d   :  { %v1060_v35 = vpop.permute.xlu1 %1059  ;;  %v1055_v58 = vpop.permute.xlu0 %1054 }
 0x17e   :  { %v1373_v2 = vmul.f32 %v1060_v35, %v989_v63  ;;  %v1372_v53 = vmul.f32 %v1055_v58, %v988_v19  ;;  %1369 = vperm.xlu1 %1516, %v213_v27   ;;  %1364 = vperm.xlu0 %1515, %v212_v61   ;;  %v547_v27 = vmul.f32 %v2357_v11, %v1770_v13  ;;  %v992_v61 = vmax.f32 %v928_v5, 0.0 }
 0x17f   :  { %v932_v13 = vadd.f32 %v2102_v24, %v548_v56  ;;  %v554_v56 = vmul.f32 %v2357_v11, %v1812_v30 }
 0x180   :  { %v1436_v12 = vadd.f32 %v1373_v2, %v1372_v53  ;;  %v931_v4 = vadd.f32 %v2090_v47, %v547_v27  ;;  %v549_v53 = vmul.f32 %v2357_v11, %v1780_v17  ;;  %v935_v27 = vadd.f32 %v2110_v32, %v551_v62 }
 0x181   :  { %v1070_v48 = vpop.permute.xlu1 %1069  ;;  %v1065_v3 = vpop.permute.xlu0 %1064 }
 0x182   :  { %v1374_v31 = vmul.f32 %v1065_v3, %v990_v54  ;;  %v1375_v9 = vmul.f32 %v1070_v48, %v991_v10  ;;  %v994_v54 = vmax.f32 %v930_v16, 0.0  ;;  %v995_v35 = vmax.f32 %v931_v4, 0.0 }
 0x183   :  { %v933_v58 = vadd.f32 %v2100_v0, %v549_v53  ;;  %v996_v48 = vmax.f32 %v932_v13, 0.0  ;;  %v552_v10 = vmul.f32 %v2357_v11, %v1802_v26  ;;  %v553_v16 = vmul.f32 %v2357_v11, %v1800_v25 }
 0x184   :  { %v1437_v63 = vadd.f32 %v1436_v12, %v1374_v31  ;;  %v550_v12 = vmul.f32 %v2357_v11, %v1792_v22  ;;  %v938_v25 = vadd.f32 %v2132_v52, %v554_v56 }
 0x185   :  { %v1080_v19 = vpop.permute.xlu1 %1079  ;;  %v1075_v14 = vpop.permute.xlu0 %1074  ;;  %v997_v31 = vmax.f32 %v933_v58, 0.0  ;;  %v936_v21 = vadd.f32 %v2122_v60, %v552_v10  ;;  %v558_v58 = vmul.f32 %v2357_v11, %v1832_v38  ;;  %v560_v10 = vmul.f32 %v2357_v11, %v1842_v42 }
 0x186   :  { %v1376_v1 = vmul.f32 %v1075_v14, %v992_v61  ;;  %v1438_v15 = vadd.f32 %v1437_v63, %v1375_v9  ;;  %v1377_v43 = vmul.f32 %v1080_v19, %v993_v57  ;;  %v934_v17 = vadd.f32 %v2112_v8, %v550_v12 }
 0x187   :  { %v999_v14 = vmax.f32 %v935_v27, 0.0  ;;  %v937_v57 = vadd.f32 %v2120_v55, %v553_v16 }
 0x188   :  { %v1439_v40 = vadd.f32 %v1438_v15, %v1376_v1  ;;  %v998_v9 = vmax.f32 %v934_v17, 0.0  ;;  %v555_v1 = vmul.f32 %v2357_v11, %v1810_v29  ;;  %v1000_v15 = vmax.f32 %v936_v21, 0.0 }
 0x189   :  { %v1090_v2 = vpop.permute.xlu1 %1089  ;;  %v1085_v18 = vpop.permute.xlu0 %1084  ;;  %v559_v17 = vmul.f32 %v2357_v11, %v1830_v37  ;;  %v944_v37 = vadd.f32 %v2162_v28, %v560_v10 }
 0x18a   :  { %v1378_v5 = vmul.f32 %v1085_v18, %v994_v54  ;;  %v1440_v47 = vadd.f32 %v1439_v40, %v1377_v43  ;;  %v1379_v3 = vmul.f32 %v1090_v2, %v995_v35  ;;  %v556_v54 = vmul.f32 %v2357_v11, %v1822_v34 }
 0x18b   :  { %v1001_v43 = vmax.f32 %v937_v57, 0.0  ;;  %v939_v40 = vadd.f32 %v2130_v39, %v555_v1  ;;  %v557_v2 = vmul.f32 %v2357_v11, %v1820_v33  ;;  %v1002_v18 = vmax.f32 %v938_v25, 0.0 }
 0x18c   :  { %v1441_v24 = vadd.f32 %v1440_v47, %v1378_v5  ;;  %v940_v29 = vadd.f32 %v2142_v44, %v556_v54  ;;  %v942_v33 = vadd.f32 %v2152_v36, %v558_v58  ;;  %v564_v57 = vmul.f32 %v2357_v11, %v1862_v50 }
 0x18d   :  { %v1100_v6 = vpop.permute.xlu1 %1099  ;;  %v1095_v22 = vpop.permute.xlu0 %1094  ;;  %v1003_v47 = vmax.f32 %v939_v40, 0.0  ;;  %v941_v62 = vadd.f32 %v2140_v23, %v557_v2  ;;  %v565_v25 = vmul.f32 %v2357_v11, %v1860_v49  ;;  %v2671_v49 = vld [vmem:[#allocation44_spill] sm:$0xff] }
 0x18e   :  { %v1380_v61 = vmul.f32 %v1095_v22, %v996_v48  ;;  %v1442_v0 = vadd.f32 %v1441_v24, %v1379_v3  ;;  %v1381_v63 = vmul.f32 %v1100_v6, %v997_v31  ;;  %v1004_v3 = vmax.f32 %v940_v29, 0.0 }
 0x18f   :  { %v1005_v22 = vmax.f32 %v941_v62, 0.0  ;;  %v943_v31 = vadd.f32 %v2150_v7, %v559_v17  ;;  %v2673_v17 = vld [vmem:[#allocation43_spill] sm:$0xff] }
 0x190   :  { %v1443_v8 = vadd.f32 %v1442_v0, %v1380_v61  ;;  %v561_v61 = vmul.f32 %v2357_v11, %v1840_v41  ;;  %v1006_v0 = vmax.f32 %v942_v33, 0.0 }
 0x191   :  { %v1110_v19 = vpop.permute.xlu1 %1109  ;;  %v1105_v26 = vpop.permute.xlu0 %1104 }
 0x192   :  { %v1382_v4 = vmul.f32 %v1105_v26, %v998_v9  ;;  %v1444_v32 = vadd.f32 %v1443_v8, %v1381_v63  ;;  %v1383_v53 = vmul.f32 %v1110_v19, %v999_v14  ;;  %v562_v9 = vmul.f32 %v2357_v11, %v1852_v46 }
 0x193   :  { %v1007_v63 = vmax.f32 %v943_v31, 0.0  ;;  %v945_v8 = vadd.f32 %v2160_v59, %v561_v61  ;;  %v563_v19 = vmul.f32 %v2357_v11, %v1850_v45  ;;  %v1008_v26 = vmax.f32 %v944_v37, 0.0  ;;  %v2667_v45 = vld [vmem:[#allocation42_spill] sm:$0xff] }
 0x194   :  { %v1445_v60 = vadd.f32 %v1444_v32, %v1382_v4  ;;  %v946_v41 = vadd.f32 %v2172_v20, %v562_v9 }
 0x195   :  { %v1120_v13 = vpop.permute.xlu1 %1119  ;;  %v1115_v30 = vpop.permute.xlu0 %1114  ;;  %v1009_v32 = vmax.f32 %v945_v8, 0.0  ;;  %v947_v1 = vadd.f32 %v2170_v51, %v563_v19 }
 0x196   :  { %v1384_v12 = vmul.f32 %v1115_v30, %v1000_v15  ;;  %v1446_v55 = vadd.f32 %v1445_v60, %v1383_v53  ;;  %v1385_v35 = vmul.f32 %v1120_v13, %v1001_v43  ;;  %v1010_v53 = vmax.f32 %v946_v41, 0.0  ;;  %v2668_v13 = vld [vmem:[#allocation4_spill] sm:$0xff] }
 0x197   :  { %v948_v60 = vadd.f32 %v2667_v45, %v564_v57  ;;  %v566_v30 = vmul.f32 %v2357_v11, %v2668_v13  ;;  %v1011_v40 = vmax.f32 %v947_v1, 0.0 }
 0x198   :  { %v1447_v52 = vadd.f32 %v1446_v55, %v1384_v12  ;;  %v2669_v12 = vld [vmem:[#allocation41_spill] sm:$0xff] }
 0x199   :  { %v1130_v5 = vpop.permute.xlu1 %1129  ;;  %v1125_v34 = vpop.permute.xlu0 %1124  ;;  %v949_v55 = vadd.f32 %v2669_v12, %v565_v25  ;;  %v2682_v25 = vld [vmem:[#allocation9_spill] sm:$0xff] }
 0x19a   :  { %v1386_v48 = vmul.f32 %v1125_v34, %v1002_v18  ;;  %v1448_v39 = vadd.f32 %v1447_v52, %v1385_v35  ;;  %v1387_v24 = vmul.f32 %v1130_v5, %v1003_v47  ;;  %v2670_v18 = vld [vmem:[#allocation3_spill] sm:$0xff]  ;;  %v1012_v35 = vmax.f32 %v948_v60, 0.0  ;;  %v2672_v34 = vld [vmem:[#allocation6_spill] sm:$0xff] }
 0x19b   :  { %v567_v29 = vmul.f32 %v2357_v11, %v2670_v18  ;;  %v950_v52 = vadd.f32 %v2671_v49, %v566_v30  ;;  %v568_v47 = vmul.f32 %v2357_v11, %v2672_v34  ;;  %v2683_v60 = vld [vmem:[#allocation50_spill] sm:$0xff]  ;;  %v2684_v30 = vld [vmem:[#allocation12_spill] sm:$0xff] }
 0x19c   :  { %v1449_v44 = vadd.f32 %v1448_v39, %v1386_v48  ;;  %v1013_v39 = vmax.f32 %v949_v55, 0.0  ;;  %v2685_v55 = vld [vmem:[#allocation49_spill] sm:$0xff] }
 0x19d   :  { %v1140_v6 = vpop.permute.xlu1 %1139  ;;  %v1135_v38 = vpop.permute.xlu0 %1134 }
 0x19e   :  { %v1388_v27 = vmul.f32 %v1135_v38, %v1004_v3  ;;  %v1450_v23 = vadd.f32 %v1449_v44, %v1387_v24  ;;  %v1389_v16 = vmul.f32 %v1140_v6, %v1005_v22  ;;  %v951_v3 = vadd.f32 %v2673_v17, %v567_v29  ;;  %v2674_v44 = vld [vmem:[#allocation5_spill] sm:$0xff]  ;;  %v2675_v38 = vld [vmem:[#allocation46_spill] sm:$0xff]  ;;  %v2686_v29 = vld [vmem:[#allocation11_spill] sm:$0xff] }
 0x19f   :  { %v569_v10 = vmul.f32 %v2357_v11, %v2674_v44  ;;  %v1014_v6 = vmax.f32 %v950_v52, 0.0  ;;  %v952_v22 = vadd.f32 %v2675_v38, %v568_v47  ;;  %v2687_v52 = vld [vmem:[#allocation52_spill] sm:$0xff]  ;;  %v2688_v47 = vld [vmem:[#allocation14_spill] sm:$0xff] }
 0x1a0   :  { %v1451_v36 = vadd.f32 %v1450_v23, %v1388_v27  ;;  %v2676_v23 = vld [vmem:[#allocation8_spill] sm:$0xff] }
 0x1a1   :  { %v1150_v21 = vpop.permute.xlu1 %1149  ;;  %v1145_v42 = vpop.permute.xlu0 %1144  ;;  %v570_v61 = vmul.f32 %v2357_v11, %v2676_v23 }
 0x1a2   :  { %v1390_v56 = vmul.f32 %v1145_v42, %v1006_v0  ;;  %v1452_v7 = vadd.f32 %v1451_v36, %v1389_v16  ;;  %v1391_v14 = vmul.f32 %v1150_v21, %v1007_v63  ;;  %v1015_v16 = vmax.f32 %v951_v3, 0.0  ;;  %v2677_v36 = vld [vmem:[#allocation45_spill] sm:$0xff]  ;;  %v2678_v63 = vld [vmem:[#allocation7_spill] sm:$0xff] }
 0x1a3   :  { %v953_v9 = vadd.f32 %v2677_v36, %v569_v10  ;;  %v571_v8 = vmul.f32 %v2357_v11, %v2678_v63  ;;  %v2689_v3 = vld [vmem:[#allocation51_spill] sm:$0xff]  ;;  %v2690_v10 = vld [vmem:[#allocation13_spill] sm:$0xff] }
 0x1a4   :  { %v1453_v28 = vadd.f32 %v1452_v7, %v1390_v56  ;;  %v1016_v56 = vmax.f32 %v952_v22, 0.0  ;;  %v2679_v7 = vld [vmem:[#allocation48_spill] sm:$0xff]  ;;  %v2691_v22 = vld [vmem:[#allocation54_spill] sm:$0xff] }
 0x1a5   :  { %v1160_v4 = vpop.permute.xlu1 %1159  ;;  %v1155_v46 = vpop.permute.xlu0 %1154  ;;  %v954_v19 = vadd.f32 %v2679_v7, %v570_v61  ;;  %v2692_v61 = vld [vmem:[#allocation16_spill] sm:$0xff] }
 0x1a6   :  { %v1392_v15 = vmul.f32 %v1155_v46, %v1008_v26  ;;  %v1454_v59 = vadd.f32 %v1453_v28, %v1391_v14  ;;  %v1393_v54 = vmul.f32 %v1160_v4, %v1009_v32  ;;  %v2680_v14 = vld [vmem:[#allocation10_spill] sm:$0xff]  ;;  %v1017_v46 = vmax.f32 %v953_v9, 0.0  ;;  %v2681_v32 = vld [vmem:[#allocation47_spill] sm:$0xff]  ;;  %v2693_v9 = vld [vmem:[#allocation53_spill] sm:$0xff] }
 0x1a7   :  { %v572_v28 = vmul.f32 %v2357_v11, %v2680_v14  ;;  %v955_v1 = vadd.f32 %v2681_v32, %v571_v8  ;;  %v1018_v45 = vmax.f32 %v954_v19, 0.0  ;;  %v2694_v8 = vld [vmem:[#allocation15_spill] sm:$0xff]  ;;  %v2695_v19 = vld [vmem:[#allocation56_spill] sm:$0xff] }
 0x1a8   :  { %v1455_v20 = vadd.f32 %v1454_v59, %v1392_v15 }
 0x1a9   :  { %v1170_v43 = vpop.permute.xlu1 %1169  ;;  %v1165_v50 = vpop.permute.xlu0 %1164  ;;  %v1019_v12 = vmax.f32 %v955_v1, 0.0  ;;  %v2697_v1 = vld [vmem:[#allocation55_spill] sm:$0xff] }
 0x1aa   :  { %v1394_v2 = vmul.f32 %v1165_v50, %v1010_v53  ;;  %v1456_v51 = vadd.f32 %v1455_v20, %v1393_v54  ;;  %v1395_v58 = vmul.f32 %v1170_v43, %v1011_v40  ;;  %v573_v53 = vmul.f32 %v2357_v11, %v2682_v25 }
 0x1ab   :  { %v956_v54 = vadd.f32 %v2683_v60, %v572_v28  ;;  %v574_v43 = vmul.f32 %v2357_v11, %v2684_v30  ;;  %v2696_v28 = vld [vmem:[#allocation18_spill] sm:$0xff] }
 0x1ac   :  { %v1457_v5 = vadd.f32 %v1456_v51, %v1394_v2  ;;  %v957_v2 = vadd.f32 %v2685_v55, %v573_v53  ;;  %v2698_v53 = vld [vmem:[#allocation17_spill] sm:$0xff] }
 0x1ad   :  { %v1180_v62 = vpop.permute.xlu1 %1179  ;;  %v1175_v48 = vpop.permute.xlu0 %1174  ;;  %v1020_v49 = vmax.f32 %v956_v54, 0.0  ;;  %v2699_v54 = vld [vmem:[#allocation58_spill] sm:$0xff] }
 0x1ae   :  { %v1396_v33 = vmul.f32 %v1175_v48, %v1012_v35  ;;  %v1458_v24 = vadd.f32 %v1457_v5, %v1395_v58  ;;  %v1397_v31 = vmul.f32 %v1180_v62, %v1013_v39  ;;  %v575_v35 = vmul.f32 %v2357_v11, %v2686_v29 }
 0x1af   :  { %v958_v58 = vadd.f32 %v2687_v52, %v574_v43  ;;  %v576_v62 = vmul.f32 %v2357_v11, %v2688_v47  ;;  %v1021_v17 = vmax.f32 %v957_v2, 0.0  ;;  %v2700_v43 = vld [vmem:[#allocation20_spill] sm:$0xff]  ;;  %v2701_v2 = vld [vmem:[#allocation57_spill] sm:$0xff] }
 0x1b0   :  { %v1459_v27 = vadd.f32 %v1458_v24, %v1396_v33  ;;  %v959_v33 = vadd.f32 %v2689_v3, %v575_v35  ;;  %v2702_v35 = vld [vmem:[#allocation19_spill] sm:$0xff] }
 0x1b1   :  { %v1190_v0 = vpop.permute.xlu1 %1189  ;;  %v1185_v37 = vpop.permute.xlu0 %1184  ;;  %v1022_v38 = vmax.f32 %v958_v58, 0.0  ;;  %v2703_v58 = vld [vmem:[#allocation60_spill] sm:$0xff] }
 0x1b2   :  { %v1398_v21 = vmul.f32 %v1185_v37, %v1014_v6  ;;  %v1460_v42 = vadd.f32 %v1459_v27, %v1397_v31  ;;  %v1399_v26 = vmul.f32 %v1190_v0, %v1015_v16  ;;  %v577_v6 = vmul.f32 %v2357_v11, %v2690_v10 }
 0x1b3   :  { %v960_v31 = vadd.f32 %v2691_v22, %v576_v62  ;;  %v578_v0 = vmul.f32 %v2357_v11, %v2692_v61  ;;  %v1023_v36 = vmax.f32 %v959_v33, 0.0  ;;  %v2704_v62 = vld [vmem:[#allocation22_spill] sm:$0xff]  ;;  %v2705_v33 = vld [vmem:[#allocation59_spill] sm:$0xff] }
 0x1b4   :  { %v1461_v41 = vadd.f32 %v1460_v42, %v1398_v21  ;;  %v961_v21 = vadd.f32 %v2693_v9, %v577_v6  ;;  %v2706_v6 = vld [vmem:[#allocation21_spill] sm:$0xff] }
 0x1b5   :  { %v1200_v57 = vpop.permute.xlu1 %1199  ;;  %v1195_v4 = vpop.permute.xlu0 %1194  ;;  %v1024_v7 = vmax.f32 %v960_v31, 0.0  ;;  %v2707_v31 = vld [vmem:[#allocation62_spill] sm:$0xff] }
 0x1b6   :  { %v1400_v15 = vmul.f32 %v1195_v4, %v1016_v56  ;;  %v1462_v59 = vadd.f32 %v1461_v41, %v1399_v26  ;;  %v1401_v20 = vmul.f32 %v1200_v57, %v1017_v46  ;;  %v579_v56 = vmul.f32 %v2357_v11, %v2694_v8 }
 0x1b7   :  { %v962_v26 = vadd.f32 %v2695_v19, %v578_v0  ;;  %v580_v57 = vmul.f32 %v2357_v11, %v2696_v28  ;;  %v1025_v32 = vmax.f32 %v961_v21, 0.0  ;;  %v2708_v0 = vld [vmem:[#allocation24_spill] sm:$0xff]  ;;  %v2709_v21 = vld [vmem:[#allocation61_spill] sm:$0xff] }
 0x1b8   :  { %v1463_v13 = vadd.f32 %v1462_v59, %v1400_v15  ;;  %v963_v15 = vadd.f32 %v2697_v1, %v579_v56  ;;  %v2710_v56 = vld [vmem:[#allocation23_spill] sm:$0xff] }
 0x1b9   :  { %v1210_v50 = vpop.permute.xlu1 %1209  ;;  %v1205_v40 = vpop.permute.xlu0 %1204  ;;  %v1026_v60 = vmax.f32 %v962_v26, 0.0  ;;  %v2711_v26 = vld [vmem:[#allocation64_spill] sm:$0xff] }
 0x1ba   :  { %v1402_v51 = vmul.f32 %v1205_v40, %v1018_v45  ;;  %v1464_v18 = vadd.f32 %v1463_v13, %v1401_v20  ;;  %v1403_v5 = vmul.f32 %v1210_v50, %v1019_v12  ;;  %v581_v45 = vmul.f32 %v2357_v11, %v2698_v53 }
 0x1bb   :  { %v964_v20 = vadd.f32 %v2699_v54, %v580_v57  ;;  %v582_v50 = vmul.f32 %v2357_v11, %v2700_v43  ;;  %v1027_v55 = vmax.f32 %v963_v15, 0.0  ;;  %v2712_v57 = vld [vmem:[#allocation26_spill] sm:$0xff]  ;;  %v2713_v15 = vld [vmem:[#allocation63_spill] sm:$0xff] }
 0x1bc   :  { %v1465_v34 = vadd.f32 %v1464_v18, %v1402_v51  ;;  %v965_v51 = vadd.f32 %v2701_v2, %v581_v45  ;;  %v2714_v45 = vld [vmem:[#allocation25_spill] sm:$0xff] }
 0x1bd   :  { %v1220_v48 = vpop.permute.xlu1 %1219  ;;  %v1215_v39 = vpop.permute.xlu0 %1214  ;;  %v1028_v52 = vmax.f32 %v964_v20, 0.0  ;;  %v2715_v20 = vld [vmem:[#allocation66_spill] sm:$0xff] }
 0x1be   :  { %v1404_v24 = vmul.f32 %v1215_v39, %v1020_v49  ;;  %v1466_v44 = vadd.f32 %v1465_v34, %v1403_v5  ;;  %v1405_v27 = vmul.f32 %v1220_v48, %v1021_v17  ;;  %v583_v49 = vmul.f32 %v2357_v11, %v2702_v35 }
 0x1bf   :  { %v966_v5 = vadd.f32 %v2703_v58, %v582_v50  ;;  %v584_v48 = vmul.f32 %v2357_v11, %v2704_v62  ;;  %v1029_v3 = vmax.f32 %v965_v51, 0.0  ;;  %v2716_v50 = vld [vmem:[#allocation28_spill] sm:$0xff]  ;;  %v2717_v51 = vld [vmem:[#allocation65_spill] sm:$0xff] }
 0x1c0   :  { %v1467_v23 = vadd.f32 %v1466_v44, %v1404_v24  ;;  %v967_v24 = vadd.f32 %v2705_v33, %v583_v49  ;;  %v2718_v49 = vld [vmem:[#allocation27_spill] sm:$0xff] }
 0x1c1   :  { %v1230_v37 = vpop.permute.xlu1 %1229  ;;  %v1225_v16 = vpop.permute.xlu0 %1224  ;;  %v1030_v22 = vmax.f32 %v966_v5, 0.0  ;;  %v2719_v5 = vld [vmem:[#allocation68_spill] sm:$0xff] }
 0x1c2   :  { %v1406_v42 = vmul.f32 %v1225_v16, %v1022_v38  ;;  %v1468_v63 = vadd.f32 %v1467_v23, %v1405_v27  ;;  %v1407_v41 = vmul.f32 %v1230_v37, %v1023_v36  ;;  %v585_v38 = vmul.f32 %v2357_v11, %v2706_v6 }
 0x1c3   :  { %v968_v27 = vadd.f32 %v2707_v31, %v584_v48  ;;  %v586_v37 = vmul.f32 %v2357_v11, %v2708_v0  ;;  %v1031_v9 = vmax.f32 %v967_v24, 0.0  ;;  %v2720_v48 = vld [vmem:[#allocation30_spill] sm:$0xff]  ;;  %v2721_v24 = vld [vmem:[#allocation67_spill] sm:$0xff] }
 0x1c4   :  { %v1469_v14 = vadd.f32 %v1468_v63, %v1406_v42  ;;  %v969_v42 = vadd.f32 %v2709_v21, %v585_v38  ;;  %v2722_v38 = vld [vmem:[#allocation29_spill] sm:$0xff] }
 0x1c5   :  { %v1240_v4 = vpop.permute.xlu1 %1239  ;;  %v1235_v46 = vpop.permute.xlu0 %1234  ;;  %v1032_v19 = vmax.f32 %v968_v27, 0.0  ;;  %v2723_v27 = vld [vmem:[#allocation70_spill] sm:$0xff] }
 0x1c6   :  { %v1408_v59 = vmul.f32 %v1235_v46, %v1024_v7  ;;  %v1470_v25 = vadd.f32 %v1469_v14, %v1407_v41  ;;  %v1409_v13 = vmul.f32 %v1240_v4, %v1025_v32  ;;  %v587_v7 = vmul.f32 %v2357_v11, %v2710_v56 }
 0x1c7   :  { %v970_v41 = vadd.f32 %v2711_v26, %v586_v37  ;;  %v588_v4 = vmul.f32 %v2357_v11, %v2712_v57  ;;  %v1033_v1 = vmax.f32 %v969_v42, 0.0  ;;  %v2724_v37 = vld [vmem:[#allocation32_spill] sm:$0xff]  ;;  %v2725_v42 = vld [vmem:[#allocation69_spill] sm:$0xff] }
 0x1c8   :  { %v1471_v30 = vadd.f32 %v1470_v25, %v1408_v59  ;;  %v971_v59 = vadd.f32 %v2713_v15, %v587_v7  ;;  %v2726_v7 = vld [vmem:[#allocation31_spill] sm:$0xff] }
 0x1c9   :  { %v1250_v40 = vpop.permute.xlu1 %1249  ;;  %v1245_v12 = vpop.permute.xlu0 %1244  ;;  %v1034_v54 = vmax.f32 %v970_v41, 0.0  ;;  %v2727_v41 = vld [vmem:[#allocation72_spill] sm:$0xff] }
 0x1ca   :  { %v1410_v18 = vmul.f32 %v1245_v12, %v1026_v60  ;;  %v1472_v29 = vadd.f32 %v1471_v30, %v1409_v13  ;;  %v1411_v34 = vmul.f32 %v1250_v40, %v1027_v55  ;;  %v589_v60 = vmul.f32 %v2357_v11, %v2714_v45 }
 0x1cb   :  { %v972_v13 = vadd.f32 %v2715_v20, %v588_v4  ;;  %v590_v40 = vmul.f32 %v2357_v11, %v2716_v50  ;;  %v1035_v2 = vmax.f32 %v971_v59, 0.0  ;;  %v2728_v4 = vld [vmem:[#allocation34_spill] sm:$0xff]  ;;  %v2729_v59 = vld [vmem:[#allocation71_spill] sm:$0xff] }
 0x1cc   :  { %v1473_v47 = vadd.f32 %v1472_v29, %v1410_v18  ;;  %v973_v18 = vadd.f32 %v2717_v51, %v589_v60  ;;  %v2730_v60 = vld [vmem:[#allocation33_spill] sm:$0xff] }
 0x1cd   :  { %v1260_v39 = vpop.permute.xlu1 %1259  ;;  %v1255_v17 = vpop.permute.xlu0 %1254  ;;  %v1036_v58 = vmax.f32 %v972_v13, 0.0  ;;  %v2731_v13 = vld [vmem:[#allocation74_spill] sm:$0xff] }
 0x1ce   :  { %v1412_v44 = vmul.f32 %v1255_v17, %v1028_v52  ;;  %v1474_v10 = vadd.f32 %v1473_v47, %v1411_v34  ;;  %v1413_v23 = vmul.f32 %v1260_v39, %v1029_v3  ;;  %v591_v52 = vmul.f32 %v2357_v11, %v2718_v49 }
 0x1cf   :  { %v974_v34 = vadd.f32 %v2719_v5, %v590_v40  ;;  %v592_v39 = vmul.f32 %v2357_v11, %v2720_v48  ;;  %v1037_v33 = vmax.f32 %v973_v18, 0.0  ;;  %v2732_v40 = vld [vmem:[#allocation36_spill] sm:$0xff]  ;;  %v2733_v18 = vld [vmem:[#allocation73_spill] sm:$0xff] }
 0x1d0   :  { %v1475_v61 = vadd.f32 %v1474_v10, %v1412_v44  ;;  %v975_v44 = vadd.f32 %v2721_v24, %v591_v52  ;;  %v2734_v52 = vld [vmem:[#allocation35_spill] sm:$0xff] }
 0x1d1   :  { %v1270_v16 = vpop.permute.xlu1 %1269  ;;  %v1265_v36 = vpop.permute.xlu0 %1264  ;;  %v1038_v31 = vmax.f32 %v974_v34, 0.0  ;;  %v2735_v34 = vld [vmem:[#allocation76_spill] sm:$0xff] }
 0x1d2   :  { %v1414_v63 = vmul.f32 %v1265_v36, %v1030_v22  ;;  %v1476_v8 = vadd.f32 %v1475_v61, %v1413_v23  ;;  %v1415_v14 = vmul.f32 %v1270_v16, %v1031_v9  ;;  %v593_v22 = vmul.f32 %v2357_v11, %v2722_v38 }
 0x1d3   :  { %v976_v23 = vadd.f32 %v2723_v27, %v592_v39  ;;  %v594_v16 = vmul.f32 %v2357_v11, %v2724_v37  ;;  %v1039_v21 = vmax.f32 %v975_v44, 0.0  ;;  %v2736_v39 = vld [vmem:[#allocation38_spill] sm:$0xff]  ;;  %v2737_v44 = vld [vmem:[#allocation75_spill] sm:$0xff] }
 0x1d4   :  { %v1477_v28 = vadd.f32 %v1476_v8, %v1414_v63  ;;  %v977_v63 = vadd.f32 %v2725_v42, %v593_v22  ;;  %v2738_v22 = vld [vmem:[#allocation37_spill] sm:$0xff] }
 0x1d5   :  { %v1280_v46 = vpop.permute.xlu1 %1279  ;;  %v1275_v32 = vpop.permute.xlu0 %1274  ;;  %v1040_v26 = vmax.f32 %v976_v23, 0.0  ;;  %v2739_v23 = vld [vmem:[#allocation78_spill] sm:$0xff] }
 0x1d6   :  { %v1416_v25 = vmul.f32 %v1275_v32, %v1032_v19  ;;  %v1478_v53 = vadd.f32 %v1477_v28, %v1415_v14  ;;  %v1417_v30 = vmul.f32 %v1280_v46, %v1033_v1  ;;  %v595_v19 = vmul.f32 %v2357_v11, %v2726_v7 }
 0x1d7   :  { %v978_v14 = vadd.f32 %v2727_v41, %v594_v16  ;;  %v596_v46 = vmul.f32 %v2357_v11, %v2728_v4  ;;  %v1041_v15 = vmax.f32 %v977_v63, 0.0  ;;  %v2740_v16 = vld [vmem:[#allocation40_spill] sm:$0xff]  ;;  %v2741_v63 = vld [vmem:[#allocation77_spill] sm:$0xff] }
 0x1d8   :  { %v1479_v43 = vadd.f32 %v1478_v53, %v1416_v25  ;;  %v979_v25 = vadd.f32 %v2729_v59, %v595_v19  ;;  %v2742_v19 = vld [vmem:[#allocation39_spill] sm:$0xff] }
 0x1d9   :  { %v1290_v12 = vpop.permute.xlu1 %1289  ;;  %v1285_v55 = vpop.permute.xlu0 %1284  ;;  %v1042_v20 = vmax.f32 %v978_v14, 0.0  ;;  %v2743_v14 = vld [vmem:[#allocation80_spill] sm:$0xff] }
 0x1da   :  { %v1418_v29 = vmul.f32 %v1285_v55, %v1034_v54  ;;  %v1480_v35 = vadd.f32 %v1479_v43, %v1417_v30  ;;  %v1419_v47 = vmul.f32 %v1290_v12, %v1035_v2  ;;  %v597_v54 = vmul.f32 %v2357_v11, %v2730_v60 }
 0x1db   :  { %v980_v30 = vadd.f32 %v2731_v13, %v596_v46  ;;  %v598_v12 = vmul.f32 %v2357_v11, %v2732_v40  ;;  %v1043_v51 = vmax.f32 %v979_v25, 0.0 }
 0x1dc   :  { %v1481_v62 = vadd.f32 %v1480_v35, %v1418_v29  ;;  %v981_v29 = vadd.f32 %v2733_v18, %v597_v54 }
 0x1dd   :  { %v1300_v17 = vpop.permute.xlu1 %1299  ;;  %v1295_v3 = vpop.permute.xlu0 %1294  ;;  %v1044_v5 = vmax.f32 %v980_v30, 0.0 }
 0x1de   :  { %v1420_v10 = vmul.f32 %v1295_v3, %v1036_v58  ;;  %v1482_v6 = vadd.f32 %v1481_v62, %v1419_v47  ;;  %v1421_v61 = vmul.f32 %v1300_v17, %v1037_v33  ;;  %v599_v58 = vmul.f32 %v2357_v11, %v2734_v52 }
 0x1df   :  { %v982_v47 = vadd.f32 %v2735_v34, %v598_v12  ;;  %v600_v17 = vmul.f32 %v2357_v11, %v2736_v39  ;;  %v1045_v24 = vmax.f32 %v981_v29, 0.0 }
 0x1e0   :  { %v1483_v0 = vadd.f32 %v1482_v6, %v1420_v10  ;;  %v983_v10 = vadd.f32 %v2737_v44, %v599_v58 }
 0x1e1   :  { %v1310_v36 = vpop.permute.xlu1 %1309  ;;  %v1305_v9 = vpop.permute.xlu0 %1304  ;;  %v1046_v27 = vmax.f32 %v982_v47, 0.0 }
 0x1e2   :  { %v1422_v8 = vmul.f32 %v1305_v9, %v1038_v31  ;;  %v1484_v56 = vadd.f32 %v1483_v0, %v1421_v61  ;;  %v1423_v28 = vmul.f32 %v1310_v36, %v1039_v21  ;;  %v601_v31 = vmul.f32 %v2357_v11, %v2738_v22 }
 0x1e3   :  { %v984_v61 = vadd.f32 %v2739_v23, %v600_v17  ;;  %v602_v36 = vmul.f32 %v2357_v11, %v2740_v16  ;;  %v1047_v42 = vmax.f32 %v983_v10, 0.0 }
 0x1e4   :  { %v1485_v57 = vadd.f32 %v1484_v56, %v1422_v8  ;;  %v985_v8 = vadd.f32 %v2741_v63, %v601_v31 }
 0x1e5   :  { %v1320_v32 = vpop.permute.xlu1 %1319  ;;  %v1315_v1 = vpop.permute.xlu0 %1314  ;;  %v1048_v41 = vmax.f32 %v984_v61, 0.0 }
 0x1e6   :  { %v1424_v53 = vmul.f32 %v1315_v1, %v1040_v26  ;;  %v1486_v45 = vadd.f32 %v1485_v57, %v1423_v28  ;;  %v1425_v43 = vmul.f32 %v1320_v32, %v1041_v15  ;;  %v603_v26 = vmul.f32 %v2357_v11, %v2742_v19  ;;  %v2744_v15 = vld [vmem:[#allocation79_spill] sm:$0xff] }
 0x1e7   :  { %v986_v28 = vadd.f32 %v2743_v14, %v602_v36  ;;  %v1049_v1 = vmax.f32 %v985_v8, 0.0 }
 0x1e8   :  { %v1487_v50 = vadd.f32 %v1486_v45, %v1424_v53  ;;  %v987_v59 = vadd.f32 %v2744_v15, %v603_v26 }
 0x1e9   :  { %v1330_v55 = vpop.permute.xlu1 %1329  ;;  %v1325_v2 = vpop.permute.xlu0 %1324  ;;  %v1050_v45 = vmax.f32 %v986_v28, 0.0 }
 0x1ea   :  { %v1426_v35 = vmul.f32 %v1325_v2, %v1042_v20  ;;  %v1488_v49 = vadd.f32 %v1487_v50, %v1425_v43  ;;  %v1427_v62 = vmul.f32 %v1330_v55, %v1043_v51  ;;  %v1051_v30 = vmax.f32 %v987_v59, 0.0 }
 0x1ec   :  { %v1489_v48 = vadd.f32 %v1488_v49, %v1426_v35  ;;  %v1506_v35 = vstv %s2587_s4 }
 0x1ed   :  { %v1340_v3 = vpop.permute.xlu1 %1339  ;;  %v1335_v33 = vpop.permute.xlu0 %1334 }
 0x1ee   :  { %v1428_v6 = vmul.f32 %v1335_v33, %v1044_v5  ;;  %v1490_v38 = vadd.f32 %v1489_v48, %v1427_v62  ;;  %v1429_v0 = vmul.f32 %v1340_v3, %v1045_v24 }
 0x1f0   :  { %v1491_v37 = vadd.f32 %v1490_v38, %v1428_v6 }
 0x1f1   :  { %v1350_v9 = vpop.permute.xlu1 %1349  ;;  %v1345_v21 = vpop.permute.xlu0 %1344 }
 0x1f2   :  { %v1430_v56 = vmul.f32 %v1345_v21, %v1046_v27  ;;  %v1492_v7 = vadd.f32 %v1491_v37, %v1429_v0  ;;  %v1431_v57 = vmul.f32 %v1350_v9, %v1047_v42 }
 0x1f4   :  { %v1493_v4 = vadd.f32 %v1492_v7, %v1430_v56 }
 0x1f5   :  { %v1360_v46 = vpop.permute.xlu1 %1359  ;;  %v1355_v32 = vpop.permute.xlu0 %1354 }
 0x1f6   :  { %v1432_v25 = vmul.f32 %v1355_v32, %v1048_v41  ;;  %v1494_v53 = vadd.f32 %v1493_v4, %v1431_v57  ;;  %v1433_v60 = vmul.f32 %v1360_v46, %v1049_v1 }
 0x1f8   :  { %v1495_v54 = vadd.f32 %v1494_v53, %v1432_v25 }
 0x1f9   :  { %v1370_v20 = vpop.permute.xlu1 %1369  ;;  %v1365_v13 = vpop.permute.xlu0 %1364 }
 0x1fa   :  { %v1434_v43 = vmul.f32 %v1365_v13, %v1050_v45  ;;  %v1496_v11 = vadd.f32 %v1495_v54, %v1433_v60  ;;  %v1435_v50 = vmul.f32 %v1370_v20, %v1051_v30 }
 0x1fc   :  { %v1497_v40 = vadd.f32 %v1496_v11, %v1434_v43 }
 0x1fe   :  { %v1498_v12 = vadd.f32 %v1497_v40, %v1435_v50 }
 0x200   :  { %v1499_v55 = vrot.slane %v1498_v12, 4 }
 0x202   :  { %v1500_v2 = vadd.f32 %v1499_v55, %v1498_v12 }
 0x204   :  { %v1501_v51 = vrot.slane %v1500_v2, 2 }
 0x206   :  { %v1502_v18 = vadd.f32 %v1501_v51, %v1500_v2 }
 0x208   :  { %v1503_v29 = vrot.slane %v1502_v18, 1 }
 0x20a   :  { %v1504_v49 = vadd.f32 %v1503_v29, %v1502_v18 }
 0x20c   :  { %v1507_v52 = vadd.f32 %v1506_v35, %v1504_v49 }
 0x20e   :  { %1508 = vst [vmem:[%s2588_s5] sm:$0x1] %v1507_v52 }

</bundles_post_ra>
